<compile_context>
chip_gen: v5e
topology: v5e:2x2
jax: 0.10.0
libtpu: 0.0.40
codegen_flags: <defaults>
</compile_context>

<pallas_src>
import numpy as np
import jax
import jax.numpy as jnp
from jax.experimental import pallas as pl
from jax.experimental.pallas import tpu as pltpu


# --------------------------------------------------------------------------
# One fused kernel: LSTM (both streams) -> pairwise features -> classifier
# --------------------------------------------------------------------------
def _base_net_kernel(emb_ref, sel_ref, wx_ref, wh_ref, bg_ref,
                     w1_ref, b1_ref, bn1s_ref, bn1b_ref,
                     w2_ref, b2_ref, bn2s_ref, bn2b_ref,
                     w3_ref, b3_ref, out_ref):
    BN, _ = emb_ref.shape              # BN = B * N,  N = 2*T tokens (s1 | s2)
    H = wh_ref.shape[0]
    T, _, Dp = w1_ref.shape            # w1 repacked as (T, 5H, Dp)
    N = 2 * T
    B = BN // N
    Bp = sel_ref.shape[0] // (2 * T)   # 8-row padded per-token block

    wh = wh_ref[...]                   # (H, 4H)  packed gates (i, f, o, g)

    # ---- (1) hoisted input projection: one lane-dense dot for ALL samples ----
    gates_x = (jnp.dot(emb_ref[...], wx_ref[...],
                       preferred_element_type=jnp.float32)
               + bg_ref[...])                                   # (B*N, 4H)

    # ---- (2) LSTM recurrence over the sample axis (B small -> unrolled) ------
    # TODO(synk): switch to lax.fori_loop(..., unroll=True) if B/T grow.
    h = jnp.zeros((N, H), jnp.float32)
    c = jnp.zeros((N, H), jnp.float32)
    hs = []
    for s in range(B):
        gates = gates_x[s * N:(s + 1) * N, :] + jnp.dot(
            h, wh, preferred_element_type=jnp.float32)          # (N, 4H)
        sig = jax.nn.sigmoid(gates[:, :3 * H])                  # i | f | o
        g_t = jnp.tanh(gates[:, 3 * H:])                        # g
        c = sig[:, H:2 * H] * c + sig[:, :H] * g_t
        h = sig[:, 2 * H:3 * H] * jnp.tanh(c)
        hs.append(h)                                            # (N, H) per sample

    # ---- (3) sample-major -> token-major (8-row padded blocks) via MXU -------
    h_all = jnp.concatenate(hs, axis=0)                         # (B*N, H)
    sel = sel_ref[...].astype(jnp.float32)                      # exact 0/1 perm
    v12 = jnp.dot(sel, h_all, preferred_element_type=jnp.float32)   # (2*T*Bp, H)
    v1 = v12[:T * Bp, :]                                        # row t*Bp + b
    v2 = v12[T * Bp:, :]

    # ---- (4) pairwise feature slabs, lane-concatenated once ------------------
    wide = jnp.concatenate(
        [v1, jnp.abs(v1 - v2), v2, v1 * v2, (v1 + v2) * 0.5],
        axis=1)                                                 # (T*Bp, 5H)

    # ---- (5) classifier layer 1: T lane-dense dots on aligned (Bp, 5H) tiles -
    acc = jnp.dot(wide[:Bp, :], w1_ref[0],
                  preferred_element_type=jnp.float32)           # (Bp, Dp)
    for t in range(1, T):
        acc = acc + jnp.dot(wide[t * Bp:(t + 1) * Bp, :], w1_ref[t],
                            preferred_element_type=jnp.float32)

    # ---- (6) Linear1 -> (Dropout=id) -> BN1 -> Linear2 -> BN2 -> Linear3 -----
    h1 = (acc + b1_ref[...]) * bn1s_ref[...] + bn1b_ref[...]
    h2 = jnp.dot(h1, w2_ref[...], preferred_element_type=jnp.float32) + b2_ref[...]
    h2 = h2 * bn2s_ref[...] + bn2b_ref[...]
    logits = jnp.sum(h2 * w3_ref[...], axis=-1, keepdims=True) + b3_ref[...]
    out_ref[...] = jax.nn.sigmoid(logits[:B, :])


# --------------------------------------------------------------------------
# Canonical parameters (used by the pure-JAX reference)
# --------------------------------------------------------------------------
def init_params(key, vocab_size, emb_dim, hidden_dim, max_no_tokens):
    T, E, H = max_no_tokens, emb_dim, hidden_dim
    D1 = 3 * H
    ks = jax.random.split(key, 14)
    return {
        "emb": jax.random.normal(ks[0], (vocab_size, E), jnp.float32) * 0.1,
        # LSTM weights packed along 4H with gate order (i, f, o, g).
        "wx": jax.random.normal(ks[1], (E, 4 * H), jnp.float32) * 0.1,
        "wh": jax.random.normal(ks[2], (H, 4 * H), jnp.float32) * 0.1,
        "b":  jax.random.normal(ks[3], (1, 4 * H), jnp.float32) * 0.1,  # b_ih + b_hh
        # Layer 1 in canonical (5*T, H, D1) form: row (k*T + t, h) corresponds to
        # flattened torch feature index k*T*H + t*H + h.
        "w1": jax.random.normal(ks[4], (5 * T, H, D1), jnp.float32) * 0.05,
        "b1": jax.random.normal(ks[5], (1, D1), jnp.float32) * 0.05,
        "g1": jax.random.uniform(ks[6], (1, D1), jnp.float32, 0.5, 1.5),
        "be1": jax.random.normal(ks[7], (1, D1), jnp.float32) * 0.05,
        "rm1": jnp.zeros((1, D1), jnp.float32),
        "rv1": jnp.ones((1, D1), jnp.float32),
        "w2": jax.random.normal(ks[8], (D1, H), jnp.float32) * 0.05,
        "b2": jax.random.normal(ks[9], (1, H), jnp.float32) * 0.05,
        "g2": jax.random.uniform(ks[10], (1, H), jnp.float32, 0.5, 1.5),
        "be2": jax.random.normal(ks[11], (1, H), jnp.float32) * 0.05,
        "rm2": jnp.zeros((1, H), jnp.float32),
        "rv2": jnp.ones((1, H), jnp.float32),
        "w3": jax.random.normal(ks[12], (1, H), jnp.float32) * 0.05,
        "b3": jax.random.normal(ks[13], (1, 1), jnp.float32) * 0.05,
    }


# --------------------------------------------------------------------------
# Host-side packing/padding/folding, done ONCE (hoisted out of the hot path)
# --------------------------------------------------------------------------
def prepare_kernel_params(params, batch_size, eps=1e-5):
    B = batch_size
    H = params["wh"].shape[0]
    T = params["w1"].shape[0] // 5
    D1 = params["w1"].shape[-1]
    Dp = ((D1 + 127) // 128) * 128          # lane-pad classifier hidden width
    Bp = max(8, ((B + 7) // 8) * 8)         # sublane-pad per-token row blocks
    N = 2 * T

    def pad_last(a, width, fill):
        if a.shape[-1] == width:
            return a
        pad = jnp.full(a.shape[:-1] + (width - a.shape[-1],), fill, a.dtype)
        return jnp.concatenate([a, pad], axis=-1)

    # w1: (5T, H, D1) -> (T, 5H, Dp):  w1p[t, k*H + h, :] = w1[k*T + t, h, :]
    w1 = params["w1"].reshape(5, T, H, D1)
    w1p = jnp.transpose(w1, (1, 0, 2, 3)).reshape(T, 5 * H, D1)
    w1p = pad_last(w1p, Dp, 0.0)

    # Fold eval-mode BatchNorm running stats into scale/shift, then lane-pad.
    bn1_scale = params["g1"] / jnp.sqrt(params["rv1"] + eps)
    bn1_shift = params["be1"] - params["rm1"] * bn1_scale
    bn2_scale = params["g2"] / jnp.sqrt(params["rv2"] + eps)
    bn2_shift = params["be2"] - params["rm2"] * bn2_scale

    # Layer 2: zero rows on padded lanes so they contribute nothing.
    w2p = jnp.concatenate(
        [params["w2"], jnp.zeros((Dp - D1, H), jnp.float32)], axis=0)

    # Token-major permutation with 8-row padded per-token blocks (zero rows for
    # the pad), built once on the host; 0/1 is exact in bf16.
    sel = np.zeros((2 * T * Bp, B * N), np.float32)
    for half in range(2):
        for t in range(T):
            for b in range(B):
                sel[half * T * Bp + t * Bp + b, b * N + half * T + t] = 1.0

    return {
        "emb": params["emb"],
        "wx": params["wx"], "wh": params["wh"], "bg": params["b"],
        "sel": jnp.asarray(sel, dtype=jnp.bfloat16),
        "w1p": w1p,
        "b1p": pad_last(params["b1"], Dp, 0.0),
        "bn1s": pad_last(bn1_scale, Dp, 1.0),
        "bn1b": pad_last(bn1_shift, Dp, 0.0),
        "w2p": w2p, "b2": params["b2"],
        "bn2s": bn2_scale, "bn2b": bn2_shift,
        "w3": params["w3"], "b3": params["b3"],
    }


# --------------------------------------------------------------------------
# Forward: one pallas_call, everything VMEM-resident, no grid
# --------------------------------------------------------------------------
def base_net_forward(kp, s1, s2):
    B, T = s1.shape
    # Embedding lookup (XLA gather); both streams stacked along the LSTM batch
    # axis so a single recurrence handles s1 and s2 at once.
    tok = jnp.concatenate([s1, s2], axis=1)                     # (B, 2T)
    emb = kp["emb"][tok].astype(jnp.float32).reshape(B * 2 * T, -1)

    specs = [pl.BlockSpec(memory_space=pltpu.MemorySpace.VMEM) for _ in range(15)]
    return pl.pallas_call(
        _base_net_kernel,
        out_shape=jax.ShapeDtypeStruct((B, 1), jnp.float32),
        in_specs=specs,
        out_specs=pl.BlockSpec(memory_space=pltpu.MemorySpace.VMEM),
    )(emb, kp["sel"], kp["wx"], kp["wh"], kp["bg"],
      kp["w1p"], kp["b1p"], kp["bn1s"], kp["bn1b"],
      kp["w2p"], kp["b2"], kp["bn2s"], kp["bn2b"],
      kp["w3"], kp["b3"])


# --------------------------------------------------------------------------
# Pure-JAX reference (for correctness check)
# --------------------------------------------------------------------------
def reference_forward(params, s1, s2):
    eps = 1e-5
    H = params["wh"].shape[0]

    def lstm_ref(x):                     # x: (B, T, E); recurrence over axis 0
        Tb = x.shape[1]

        def step(carry, xt):
            h, c = carry
            gates = xt @ params["wx"] + h @ params["wh"] + params["b"]
            i, f, o, g = jnp.split(gates, 4, axis=-1)   # packed (i, f, o, g)
            c = jax.nn.sigmoid(f) * c + jax.nn.sigmoid(i) * jnp.tanh(g)
            h = jax.nn.sigmoid(o) * jnp.tanh(c)
            return (h, c), h

        init = (jnp.zeros((Tb, H), jnp.float32), jnp.zeros((Tb, H), jnp.float32))
        _, ys = jax.lax.scan(step, init, x)
        return ys

    v1 = lstm_ref(params["emb"][s1])
    v2 = lstm_ref(params["emb"][s2])
    feats = jnp.concatenate(
        [v1, jnp.abs(v1 - v2), v2, v1 * v2, (v1 + v2) / 2.0], axis=1)
    feats = feats.reshape(feats.shape[0], -1)

    bn1_scale = params["g1"] / jnp.sqrt(params["rv1"] + eps)
    bn1_shift = params["be1"] - params["rm1"] * bn1_scale
    bn2_scale = params["g2"] / jnp.sqrt(params["rv2"] + eps)
    bn2_shift = params["be2"] - params["rm2"] * bn2_scale

    w1_2d = params["w1"].reshape(-1, params["w1"].shape[-1])
    h1 = feats @ w1_2d + params["b1"]
    h1 = h1 * bn1_scale + bn1_shift
    h2 = h1 @ params["w2"] + params["b2"]
    h2 = h2 * bn2_scale + bn2_shift
    logits = jnp.sum(h2 * params["w3"], axis=-1, keepdims=True) + params["b3"]
    return jax.nn.sigmoid(logits)


if __name__ == "__main__":
    B = 4              # batch
    T = 8              # max_no_tokens
    E = 32             # embedding_dim
    H = 32             # hidden_dim
    VOCAB = 100
    TARGET = 1

    key = jax.random.PRNGKey(0)
    k_p, k_s1, k_s2 = jax.random.split(key, 3)
    params = init_params(k_p, VOCAB, E, H, T)
    s1 = jax.random.randint(k_s1, (B, T), 0, VOCAB, dtype=jnp.int32)
    s2 = jax.random.randint(k_s2, (B, T), 0, VOCAB, dtype=jnp.int32)

    kparams = prepare_kernel_params(params, B)     # host packing, done once
    fwd = jax.jit(base_net_forward)                # jitted hot path

    out = jax.block_until_ready(fwd(kparams, s1, s2))
    ref = jax.block_until_ready(reference_forward(params, s1, s2))

    assert out.shape == (B, TARGET), out.shape
    assert jnp.allclose(out, ref, rtol=1e-3, atol=1e-4), (out, ref)

    print("KERNEL_OK")
</pallas_src>

<mosaic_0001>
module attributes {stable_mosaic.version = 11 : i64} {
  func.func @_base_net_kernel(%arg0: memref<64x32xf32, #tpu.memory_space<vmem>>, %arg1: memref<128x64xbf16, #tpu.memory_space<vmem>>, %arg2: memref<32x128xf32, #tpu.memory_space<vmem>>, %arg3: memref<32x128xf32, #tpu.memory_space<vmem>>, %arg4: memref<1x128xf32, #tpu.memory_space<vmem>>, %arg5: memref<8x160x128xf32, #tpu.memory_space<vmem>>, %arg6: memref<1x128xf32, #tpu.memory_space<vmem>>, %arg7: memref<1x128xf32, #tpu.memory_space<vmem>>, %arg8: memref<1x128xf32, #tpu.memory_space<vmem>>, %arg9: memref<128x32xf32, #tpu.memory_space<vmem>>, %arg10: memref<1x32xf32, #tpu.memory_space<vmem>>, %arg11: memref<1x32xf32, #tpu.memory_space<vmem>>, %arg12: memref<1x32xf32, #tpu.memory_space<vmem>>, %arg13: memref<1x32xf32, #tpu.memory_space<vmem>>, %arg14: memref<1x1xf32, #tpu.memory_space<vmem>>, %arg15: memref<4x1xf32, #tpu.memory_space<vmem>>) attributes {dimension_semantics = [], scalar_prefetch = 0 : i64, scratch_operands = 0 : i64, tpu.core_type = #tpu.core_type<tc>} {
    %c0 = arith.constant 0 : index
    %c0_0 = arith.constant 0 : index
    %0 = vector.load %arg3[%c0, %c0_0] : memref<32x128xf32, #tpu.memory_space<vmem>>, vector<32x128xf32>
    %c0_1 = arith.constant 0 : index
    %c0_2 = arith.constant 0 : index
    %1 = vector.load %arg0[%c0_1, %c0_2] : memref<64x32xf32, #tpu.memory_space<vmem>>, vector<64x32xf32>
    %c0_3 = arith.constant 0 : index
    %c0_4 = arith.constant 0 : index
    %2 = vector.load %arg2[%c0_3, %c0_4] : memref<32x128xf32, #tpu.memory_space<vmem>>, vector<32x128xf32>
    %cst = arith.constant dense<0.000000e+00> : vector<64x128xf32>
    %3 = tpu.matmul %1, %2, %cst {dimension_numbers = #tpu.dot_dimension_numbers<[1], [0], [0], [1], [0, 0, 1, 1], [], []>} : vector<64x32xf32>, vector<32x128xf32>, vector<64x128xf32> -> vector<64x128xf32>
    %c0_5 = arith.constant 0 : index
    %c0_6 = arith.constant 0 : index
    %4 = vector.load %arg4[%c0_5, %c0_6] : memref<1x128xf32, #tpu.memory_space<vmem>>, vector<1x128xf32>
    %5 = vector.broadcast %4 : vector<1x128xf32> to vector<64x128xf32>
    %6 = arith.addf %3, %5 : vector<64x128xf32>
    %cst_7 = arith.constant 0.000000e+00 : f32
    %7 = vector.broadcast %cst_7 : f32 to vector<16x32xf32>
    %cst_8 = arith.constant 0.000000e+00 : f32
    %8 = vector.broadcast %cst_8 : f32 to vector<16x32xf32>
    %9 = vector.extract_strided_slice %6 {offsets = [0, 0], sizes = [16, 128], strides = [1, 1]} : vector<64x128xf32> to vector<16x128xf32>
    %cst_9 = arith.constant dense<0.000000e+00> : vector<16x128xf32>
    %10 = tpu.matmul %7, %0, %cst_9 {dimension_numbers = #tpu.dot_dimension_numbers<[1], [0], [0], [1], [0, 0, 1, 1], [], []>} : vector<16x32xf32>, vector<32x128xf32>, vector<16x128xf32> -> vector<16x128xf32>
    %11 = arith.addf %9, %10 : vector<16x128xf32>
    %12 = vector.extract_strided_slice %11 {offsets = [0, 0], sizes = [16, 96], strides = [1, 1]} : vector<16x128xf32> to vector<16x96xf32>
    %13 = arith.negf %12 : vector<16x96xf32>
    %14 = math.exp %13 : vector<16x96xf32>
    %cst_10 = arith.constant 1.000000e+00 : f32
    %15 = vector.broadcast %cst_10 : f32 to vector<16x96xf32>
    %16 = arith.addf %15, %14 : vector<16x96xf32>
    %17 = arith.divf %15, %16 : vector<16x96xf32>
    %18 = vector.extract_strided_slice %11 {offsets = [0, 96], sizes = [16, 32], strides = [1, 1]} : vector<16x128xf32> to vector<16x32xf32>
    %19 = math.tanh %18 : vector<16x32xf32>
    %20 = vector.extract_strided_slice %17 {offsets = [0, 32], sizes = [16, 32], strides = [1, 1]} : vector<16x96xf32> to vector<16x32xf32>
    %21 = arith.mulf %20, %8 : vector<16x32xf32>
    %22 = vector.extract_strided_slice %17 {offsets = [0, 0], sizes = [16, 32], strides = [1, 1]} : vector<16x96xf32> to vector<16x32xf32>
    %23 = arith.mulf %22, %19 : vector<16x32xf32>
    %24 = arith.addf %21, %23 : vector<16x32xf32>
    %25 = vector.extract_strided_slice %17 {offsets = [0, 64], sizes = [16, 32], strides = [1, 1]} : vector<16x96xf32> to vector<16x32xf32>
    %26 = math.tanh %24 : vector<16x32xf32>
    %27 = arith.mulf %25, %26 : vector<16x32xf32>
    %28 = vector.extract_strided_slice %6 {offsets = [16, 0], sizes = [16, 128], strides = [1, 1]} : vector<64x128xf32> to vector<16x128xf32>
    %cst_11 = arith.constant dense<0.000000e+00> : vector<16x128xf32>
    %29 = tpu.matmul %27, %0, %cst_11 {dimension_numbers = #tpu.dot_dimension_numbers<[1], [0], [0], [1], [0, 0, 1, 1], [], []>} : vector<16x32xf32>, vector<32x128xf32>, vector<16x128xf32> -> vector<16x128xf32>
    %30 = arith.addf %28, %29 : vector<16x128xf32>
    %31 = vector.extract_strided_slice %30 {offsets = [0, 0], sizes = [16, 96], strides = [1, 1]} : vector<16x128xf32> to vector<16x96xf32>
    %32 = arith.negf %31 : vector<16x96xf32>
    %33 = math.exp %32 : vector<16x96xf32>
    %cst_12 = arith.constant 1.000000e+00 : f32
    %34 = vector.broadcast %cst_12 : f32 to vector<16x96xf32>
    %35 = arith.addf %34, %33 : vector<16x96xf32>
    %36 = arith.divf %34, %35 : vector<16x96xf32>
    %37 = vector.extract_strided_slice %30 {offsets = [0, 96], sizes = [16, 32], strides = [1, 1]} : vector<16x128xf32> to vector<16x32xf32>
    %38 = math.tanh %37 : vector<16x32xf32>
    %39 = vector.extract_strided_slice %36 {offsets = [0, 32], sizes = [16, 32], strides = [1, 1]} : vector<16x96xf32> to vector<16x32xf32>
    %40 = arith.mulf %39, %24 : vector<16x32xf32>
    %41 = vector.extract_strided_slice %36 {offsets = [0, 0], sizes = [16, 32], strides = [1, 1]} : vector<16x96xf32> to vector<16x32xf32>
    %42 = arith.mulf %41, %38 : vector<16x32xf32>
    %43 = arith.addf %40, %42 : vector<16x32xf32>
    %44 = vector.extract_strided_slice %36 {offsets = [0, 64], sizes = [16, 32], strides = [1, 1]} : vector<16x96xf32> to vector<16x32xf32>
    %45 = math.tanh %43 : vector<16x32xf32>
    %46 = arith.mulf %44, %45 : vector<16x32xf32>
    %47 = vector.extract_strided_slice %6 {offsets = [32, 0], sizes = [16, 128], strides = [1, 1]} : vector<64x128xf32> to vector<16x128xf32>
    %cst_13 = arith.constant dense<0.000000e+00> : vector<16x128xf32>
    %48 = tpu.matmul %46, %0, %cst_13 {dimension_numbers = #tpu.dot_dimension_numbers<[1], [0], [0], [1], [0, 0, 1, 1], [], []>} : vector<16x32xf32>, vector<32x128xf32>, vector<16x128xf32> -> vector<16x128xf32>
    %49 = arith.addf %47, %48 : vector<16x128xf32>
    %50 = vector.extract_strided_slice %49 {offsets = [0, 0], sizes = [16, 96], strides = [1, 1]} : vector<16x128xf32> to vector<16x96xf32>
    %51 = arith.negf %50 : vector<16x96xf32>
    %52 = math.exp %51 : vector<16x96xf32>
    %cst_14 = arith.constant 1.000000e+00 : f32
    %53 = vector.broadcast %cst_14 : f32 to vector<16x96xf32>
    %54 = arith.addf %53, %52 : vector<16x96xf32>
    %55 = arith.divf %53, %54 : vector<16x96xf32>
    %56 = vector.extract_strided_slice %49 {offsets = [0, 96], sizes = [16, 32], strides = [1, 1]} : vector<16x128xf32> to vector<16x32xf32>
    %57 = math.tanh %56 : vector<16x32xf32>
    %58 = vector.extract_strided_slice %55 {offsets = [0, 32], sizes = [16, 32], strides = [1, 1]} : vector<16x96xf32> to vector<16x32xf32>
    %59 = arith.mulf %58, %43 : vector<16x32xf32>
    %60 = vector.extract_strided_slice %55 {offsets = [0, 0], sizes = [16, 32], strides = [1, 1]} : vector<16x96xf32> to vector<16x32xf32>
    %61 = arith.mulf %60, %57 : vector<16x32xf32>
    %62 = arith.addf %59, %61 : vector<16x32xf32>
    %63 = vector.extract_strided_slice %55 {offsets = [0, 64], sizes = [16, 32], strides = [1, 1]} : vector<16x96xf32> to vector<16x32xf32>
    %64 = math.tanh %62 : vector<16x32xf32>
    %65 = arith.mulf %63, %64 : vector<16x32xf32>
    %66 = vector.extract_strided_slice %6 {offsets = [48, 0], sizes = [16, 128], strides = [1, 1]} : vector<64x128xf32> to vector<16x128xf32>
    %cst_15 = arith.constant dense<0.000000e+00> : vector<16x128xf32>
    %67 = tpu.matmul %65, %0, %cst_15 {dimension_numbers = #tpu.dot_dimension_numbers<[1], [0], [0], [1], [0, 0, 1, 1], [], []>} : vector<16x32xf32>, vector<32x128xf32>, vector<16x128xf32> -> vector<16x128xf32>
    %68 = arith.addf %66, %67 : vector<16x128xf32>
    %69 = vector.extract_strided_slice %68 {offsets = [0, 0], sizes = [16, 96], strides = [1, 1]} : vector<16x128xf32> to vector<16x96xf32>
    %70 = arith.negf %69 : vector<16x96xf32>
    %71 = math.exp %70 : vector<16x96xf32>
    %cst_16 = arith.constant 1.000000e+00 : f32
    %72 = vector.broadcast %cst_16 : f32 to vector<16x96xf32>
    %73 = arith.addf %72, %71 : vector<16x96xf32>
    %74 = arith.divf %72, %73 : vector<16x96xf32>
    %75 = vector.extract_strided_slice %68 {offsets = [0, 96], sizes = [16, 32], strides = [1, 1]} : vector<16x128xf32> to vector<16x32xf32>
    %76 = math.tanh %75 : vector<16x32xf32>
    %77 = vector.extract_strided_slice %74 {offsets = [0, 32], sizes = [16, 32], strides = [1, 1]} : vector<16x96xf32> to vector<16x32xf32>
    %78 = arith.mulf %77, %62 : vector<16x32xf32>
    %79 = vector.extract_strided_slice %74 {offsets = [0, 0], sizes = [16, 32], strides = [1, 1]} : vector<16x96xf32> to vector<16x32xf32>
    %80 = arith.mulf %79, %76 : vector<16x32xf32>
    %81 = arith.addf %78, %80 : vector<16x32xf32>
    %82 = vector.extract_strided_slice %74 {offsets = [0, 64], sizes = [16, 32], strides = [1, 1]} : vector<16x96xf32> to vector<16x32xf32>
    %83 = math.tanh %81 : vector<16x32xf32>
    %84 = arith.mulf %82, %83 : vector<16x32xf32>
    %85 = tpu.concatenate %27, %46, %65, %84 in 0 : vector<16x32xf32>, vector<16x32xf32>, vector<16x32xf32>, vector<16x32xf32> -> vector<64x32xf32>
    %c0_17 = arith.constant 0 : index
    %c0_18 = arith.constant 0 : index
    %86 = vector.load %arg1[%c0_17, %c0_18] : memref<128x64xbf16, #tpu.memory_space<vmem>>, vector<128x64xbf16>
    %87 = arith.extf %86 : vector<128x64xbf16> to vector<128x64xf32>
    %cst_19 = arith.constant dense<0.000000e+00> : vector<128x32xf32>
    %88 = tpu.matmul %87, %85, %cst_19 {dimension_numbers = #tpu.dot_dimension_numbers<[1], [0], [0], [1], [0, 0, 1, 1], [], []>} : vector<128x64xf32>, vector<64x32xf32>, vector<128x32xf32> -> vector<128x32xf32>
    %89 = vector.extract_strided_slice %88 {offsets = [0, 0], sizes = [64, 32], strides = [1, 1]} : vector<128x32xf32> to vector<64x32xf32>
    %90 = vector.extract_strided_slice %88 {offsets = [64, 0], sizes = [64, 32], strides = [1, 1]} : vector<128x32xf32> to vector<64x32xf32>
    %91 = arith.subf %89, %90 : vector<64x32xf32>
    %92 = math.absf %91 : vector<64x32xf32>
    %93 = arith.mulf %89, %90 : vector<64x32xf32>
    %94 = arith.addf %89, %90 : vector<64x32xf32>
    %cst_20 = arith.constant 5.000000e-01 : f32
    %95 = vector.broadcast %cst_20 : f32 to vector<64x32xf32>
    %96 = arith.mulf %94, %95 : vector<64x32xf32>
    %97 = tpu.concatenate %89, %92, %90, %93, %96 in 1 : vector<64x32xf32>, vector<64x32xf32>, vector<64x32xf32>, vector<64x32xf32>, vector<64x32xf32> -> vector<64x160xf32>
    %98 = vector.extract_strided_slice %97 {offsets = [0, 0], sizes = [8, 160], strides = [1, 1]} : vector<64x160xf32> to vector<8x160xf32>
    %c0_21 = arith.constant 0 : index
    %c0_22 = arith.constant 0 : index
    %c0_23 = arith.constant 0 : index
    %99 = vector.load %arg5[%c0_21, %c0_22, %c0_23] : memref<8x160x128xf32, #tpu.memory_space<vmem>>, vector<1x160x128xf32>
    %100 = vector.shape_cast %99 : vector<1x160x128xf32> to vector<160x128xf32>
    %cst_24 = arith.constant dense<0.000000e+00> : vector<8x128xf32>
    %101 = tpu.matmul %98, %100, %cst_24 {dimension_numbers = #tpu.dot_dimension_numbers<[1], [0], [0], [1], [0, 0, 1, 1], [], []>} : vector<8x160xf32>, vector<160x128xf32>, vector<8x128xf32> -> vector<8x128xf32>
    %102 = vector.extract_strided_slice %97 {offsets = [8, 0], sizes = [8, 160], strides = [1, 1]} : vector<64x160xf32> to vector<8x160xf32>
    %c1 = arith.constant 1 : index
    %c0_25 = arith.constant 0 : index
    %c0_26 = arith.constant 0 : index
    %103 = vector.load %arg5[%c1, %c0_25, %c0_26] : memref<8x160x128xf32, #tpu.memory_space<vmem>>, vector<1x160x128xf32>
    %104 = vector.shape_cast %103 : vector<1x160x128xf32> to vector<160x128xf32>
    %cst_27 = arith.constant dense<0.000000e+00> : vector<8x128xf32>
    %105 = tpu.matmul %102, %104, %cst_27 {dimension_numbers = #tpu.dot_dimension_numbers<[1], [0], [0], [1], [0, 0, 1, 1], [], []>} : vector<8x160xf32>, vector<160x128xf32>, vector<8x128xf32> -> vector<8x128xf32>
    %106 = arith.addf %101, %105 : vector<8x128xf32>
    %107 = vector.extract_strided_slice %97 {offsets = [16, 0], sizes = [8, 160], strides = [1, 1]} : vector<64x160xf32> to vector<8x160xf32>
    %c2 = arith.constant 2 : index
    %c0_28 = arith.constant 0 : index
    %c0_29 = arith.constant 0 : index
    %108 = vector.load %arg5[%c2, %c0_28, %c0_29] : memref<8x160x128xf32, #tpu.memory_space<vmem>>, vector<1x160x128xf32>
    %109 = vector.shape_cast %108 : vector<1x160x128xf32> to vector<160x128xf32>
    %cst_30 = arith.constant dense<0.000000e+00> : vector<8x128xf32>
    %110 = tpu.matmul %107, %109, %cst_30 {dimension_numbers = #tpu.dot_dimension_numbers<[1], [0], [0], [1], [0, 0, 1, 1], [], []>} : vector<8x160xf32>, vector<160x128xf32>, vector<8x128xf32> -> vector<8x128xf32>
    %111 = arith.addf %106, %110 : vector<8x128xf32>
    %112 = vector.extract_strided_slice %97 {offsets = [24, 0], sizes = [8, 160], strides = [1, 1]} : vector<64x160xf32> to vector<8x160xf32>
    %c3 = arith.constant 3 : index
    %c0_31 = arith.constant 0 : index
    %c0_32 = arith.constant 0 : index
    %113 = vector.load %arg5[%c3, %c0_31, %c0_32] : memref<8x160x128xf32, #tpu.memory_space<vmem>>, vector<1x160x128xf32>
    %114 = vector.shape_cast %113 : vector<1x160x128xf32> to vector<160x128xf32>
    %cst_33 = arith.constant dense<0.000000e+00> : vector<8x128xf32>
    %115 = tpu.matmul %112, %114, %cst_33 {dimension_numbers = #tpu.dot_dimension_numbers<[1], [0], [0], [1], [0, 0, 1, 1], [], []>} : vector<8x160xf32>, vector<160x128xf32>, vector<8x128xf32> -> vector<8x128xf32>
    %116 = arith.addf %111, %115 : vector<8x128xf32>
    %117 = vector.extract_strided_slice %97 {offsets = [32, 0], sizes = [8, 160], strides = [1, 1]} : vector<64x160xf32> to vector<8x160xf32>
    %c4 = arith.constant 4 : index
    %c0_34 = arith.constant 0 : index
    %c0_35 = arith.constant 0 : index
    %118 = vector.load %arg5[%c4, %c0_34, %c0_35] : memref<8x160x128xf32, #tpu.memory_space<vmem>>, vector<1x160x128xf32>
    %119 = vector.shape_cast %118 : vector<1x160x128xf32> to vector<160x128xf32>
    %cst_36 = arith.constant dense<0.000000e+00> : vector<8x128xf32>
    %120 = tpu.matmul %117, %119, %cst_36 {dimension_numbers = #tpu.dot_dimension_numbers<[1], [0], [0], [1], [0, 0, 1, 1], [], []>} : vector<8x160xf32>, vector<160x128xf32>, vector<8x128xf32> -> vector<8x128xf32>
    %121 = arith.addf %116, %120 : vector<8x128xf32>
    %122 = vector.extract_strided_slice %97 {offsets = [40, 0], sizes = [8, 160], strides = [1, 1]} : vector<64x160xf32> to vector<8x160xf32>
    %c5 = arith.constant 5 : index
    %c0_37 = arith.constant 0 : index
    %c0_38 = arith.constant 0 : index
    %123 = vector.load %arg5[%c5, %c0_37, %c0_38] : memref<8x160x128xf32, #tpu.memory_space<vmem>>, vector<1x160x128xf32>
    %124 = vector.shape_cast %123 : vector<1x160x128xf32> to vector<160x128xf32>
    %cst_39 = arith.constant dense<0.000000e+00> : vector<8x128xf32>
    %125 = tpu.matmul %122, %124, %cst_39 {dimension_numbers = #tpu.dot_dimension_numbers<[1], [0], [0], [1], [0, 0, 1, 1], [], []>} : vector<8x160xf32>, vector<160x128xf32>, vector<8x128xf32> -> vector<8x128xf32>
    %126 = arith.addf %121, %125 : vector<8x128xf32>
    %127 = vector.extract_strided_slice %97 {offsets = [48, 0], sizes = [8, 160], strides = [1, 1]} : vector<64x160xf32> to vector<8x160xf32>
    %c6 = arith.constant 6 : index
    %c0_40 = arith.constant 0 : index
    %c0_41 = arith.constant 0 : index
    %128 = vector.load %arg5[%c6, %c0_40, %c0_41] : memref<8x160x128xf32, #tpu.memory_space<vmem>>, vector<1x160x128xf32>
    %129 = vector.shape_cast %128 : vector<1x160x128xf32> to vector<160x128xf32>
    %cst_42 = arith.constant dense<0.000000e+00> : vector<8x128xf32>
    %130 = tpu.matmul %127, %129, %cst_42 {dimension_numbers = #tpu.dot_dimension_numbers<[1], [0], [0], [1], [0, 0, 1, 1], [], []>} : vector<8x160xf32>, vector<160x128xf32>, vector<8x128xf32> -> vector<8x128xf32>
    %131 = arith.addf %126, %130 : vector<8x128xf32>
    %132 = vector.extract_strided_slice %97 {offsets = [56, 0], sizes = [8, 160], strides = [1, 1]} : vector<64x160xf32> to vector<8x160xf32>
    %c7 = arith.constant 7 : index
    %c0_43 = arith.constant 0 : index
    %c0_44 = arith.constant 0 : index
    %133 = vector.load %arg5[%c7, %c0_43, %c0_44] : memref<8x160x128xf32, #tpu.memory_space<vmem>>, vector<1x160x128xf32>
    %134 = vector.shape_cast %133 : vector<1x160x128xf32> to vector<160x128xf32>
    %cst_45 = arith.constant dense<0.000000e+00> : vector<8x128xf32>
    %135 = tpu.matmul %132, %134, %cst_45 {dimension_numbers = #tpu.dot_dimension_numbers<[1], [0], [0], [1], [0, 0, 1, 1], [], []>} : vector<8x160xf32>, vector<160x128xf32>, vector<8x128xf32> -> vector<8x128xf32>
    %136 = arith.addf %131, %135 : vector<8x128xf32>
    %c0_46 = arith.constant 0 : index
    %c0_47 = arith.constant 0 : index
    %137 = vector.load %arg6[%c0_46, %c0_47] : memref<1x128xf32, #tpu.memory_space<vmem>>, vector<1x128xf32>
    %138 = vector.broadcast %137 : vector<1x128xf32> to vector<8x128xf32>
    %139 = arith.addf %136, %138 : vector<8x128xf32>
    %c0_48 = arith.constant 0 : index
    %c0_49 = arith.constant 0 : index
    %140 = vector.load %arg7[%c0_48, %c0_49] : memref<1x128xf32, #tpu.memory_space<vmem>>, vector<1x128xf32>
    %141 = vector.broadcast %140 : vector<1x128xf32> to vector<8x128xf32>
    %142 = arith.mulf %139, %141 : vector<8x128xf32>
    %c0_50 = arith.constant 0 : index
    %c0_51 = arith.constant 0 : index
    %143 = vector.load %arg8[%c0_50, %c0_51] : memref<1x128xf32, #tpu.memory_space<vmem>>, vector<1x128xf32>
    %144 = vector.broadcast %143 : vector<1x128xf32> to vector<8x128xf32>
    %145 = arith.addf %142, %144 : vector<8x128xf32>
    %c0_52 = arith.constant 0 : index
    %c0_53 = arith.constant 0 : index
    %146 = vector.load %arg9[%c0_52, %c0_53] : memref<128x32xf32, #tpu.memory_space<vmem>>, vector<128x32xf32>
    %cst_54 = arith.constant dense<0.000000e+00> : vector<8x32xf32>
    %147 = tpu.matmul %145, %146, %cst_54 {dimension_numbers = #tpu.dot_dimension_numbers<[1], [0], [0], [1], [0, 0, 1, 1], [], []>} : vector<8x128xf32>, vector<128x32xf32>, vector<8x32xf32> -> vector<8x32xf32>
    %c0_55 = arith.constant 0 : index
    %c0_56 = arith.constant 0 : index
    %148 = vector.load %arg10[%c0_55, %c0_56] : memref<1x32xf32, #tpu.memory_space<vmem>>, vector<1x32xf32>
    %149 = vector.broadcast %148 : vector<1x32xf32> to vector<8x32xf32>
    %150 = arith.addf %147, %149 : vector<8x32xf32>
    %c0_57 = arith.constant 0 : index
    %c0_58 = arith.constant 0 : index
    %151 = vector.load %arg11[%c0_57, %c0_58] : memref<1x32xf32, #tpu.memory_space<vmem>>, vector<1x32xf32>
    %152 = vector.broadcast %151 : vector<1x32xf32> to vector<8x32xf32>
    %153 = arith.mulf %150, %152 : vector<8x32xf32>
    %c0_59 = arith.constant 0 : index
    %c0_60 = arith.constant 0 : index
    %154 = vector.load %arg12[%c0_59, %c0_60] : memref<1x32xf32, #tpu.memory_space<vmem>>, vector<1x32xf32>
    %155 = vector.broadcast %154 : vector<1x32xf32> to vector<8x32xf32>
    %156 = arith.addf %153, %155 : vector<8x32xf32>
    %c0_61 = arith.constant 0 : index
    %c0_62 = arith.constant 0 : index
    %157 = vector.load %arg13[%c0_61, %c0_62] : memref<1x32xf32, #tpu.memory_space<vmem>>, vector<1x32xf32>
    %158 = vector.broadcast %157 : vector<1x32xf32> to vector<8x32xf32>
    %159 = arith.mulf %156, %158 : vector<8x32xf32>
    %cst_63 = arith.constant dense<0.000000e+00> : vector<8xf32>
    %160 = vector.multi_reduction <add>, %159, %cst_63 [1] : vector<8x32xf32> to vector<8xf32>
    %161 = vector.shape_cast %160 : vector<8xf32> to vector<8x1xf32>
    %c0_64 = arith.constant 0 : index
    %c0_65 = arith.constant 0 : index
    %162 = vector.load %arg14[%c0_64, %c0_65] : memref<1x1xf32, #tpu.memory_space<vmem>>, vector<1x1xf32>
    %163 = vector.broadcast %162 : vector<1x1xf32> to vector<8x1xf32>
    %164 = arith.addf %161, %163 : vector<8x1xf32>
    %165 = vector.extract_strided_slice %164 {offsets = [0, 0], sizes = [4, 1], strides = [1, 1]} : vector<8x1xf32> to vector<4x1xf32>
    %166 = arith.negf %165 : vector<4x1xf32>
    %167 = math.exp %166 : vector<4x1xf32>
    %cst_66 = arith.constant 1.000000e+00 : f32
    %168 = vector.broadcast %cst_66 : f32 to vector<4x1xf32>
    %169 = arith.addf %168, %167 : vector<4x1xf32>
    %170 = arith.divf %168, %169 : vector<4x1xf32>
    %c0_67 = arith.constant 0 : index
    %c0_68 = arith.constant 0 : index
    %171 = vector.load %arg15[%c0_67, %c0_68] : memref<4x1xf32, #tpu.memory_space<vmem>>, vector<4x1xf32>
    tpu.vector_store %arg15[%c0_67, %c0_68], %170 {strides = array<i32>} : memref<4x1xf32, #tpu.memory_space<vmem>>, vector<4x1xf32>,
    return
  }
}

</mosaic_0001>

<bundles_post_ra>
// kernel: base_net_forward.1
= control target key start
LH: loop header
LB: loop body
LE: loop exit
PB: predicated region body
PF: predicated region fallthrough
CT: control target
= control target key end

     0   :  { %s2264_s0 = inlined_call_operand.vmem [shape: f32[64,32], index: 0, kind: input, shape index: {}]   ;;  %s2265_s1 = inlined_call_operand.vmem [shape: bf16[128,64], index: 1, kind: input, shape index: {}]   ;;  %s2266_s2 = inlined_call_operand.vmem [shape: f32[32,128], index: 2, kind: input, shape index: {}]   ;;  %s2267_s3 = inlined_call_operand.vmem [shape: f32[32,128], index: 3, kind: input, shape index: {}]   ;;  %s2268_s4 = inlined_call_operand.vmem [shape: f32[1,128], index: 4, kind: input, shape index: {}]   ;;  %s2269_s5 = inlined_call_operand.hbm [shape: f32[8,160,128], index: 5, kind: input, shape index: {}]   ;;  %s2270_s6 = inlined_call_operand.vmem [shape: f32[1,128], index: 6, kind: input, shape index: {}]   ;;  %s2271_s7 = inlined_call_operand.vmem [shape: f32[1,128], index: 7, kind: input, shape index: {}]   ;;  %s2272_s8 = inlined_call_operand.vmem [shape: f32[1,128], index: 8, kind: input, shape index: {}]   ;;  %s2273_s9 = inlined_call_operand.vmem [shape: f32[128,32], index: 9, kind: input, shape index: {}]   ;;  %s2274_s10 = inlined_call_operand.vmem [shape: f32[1,32], index: 10, kind: input, shape index: {}]   ;;  %s2275_s11 = inlined_call_operand.vmem [shape: f32[1,32], index: 11, kind: input, shape index: {}]   ;;  %s2276_s12 = inlined_call_operand.vmem [shape: f32[1,32], index: 12, kind: input, shape index: {}]   ;;  %s2277_s13 = inlined_call_operand.vmem [shape: f32[1,32], index: 13, kind: input, shape index: {}]   ;;  %s2278_s14 = inlined_call_operand.<no memory space> [shape: f32[1,1], index: 14, kind: input, shape index: {}]   ;;  %s2279_s15 = inlined_call_operand.vmem [shape: f32[4,1], index: 15, kind: output, shape index: {}]  }
   0x1   :  { %v20_v0 = vstv %s2278_s14 }
   0x2   :  { %21 = vst [vmem:[#allocation2] sm:$0x1] %v20_v0 }
   0x3   :  { %22 = vsyncpa [#allocation4], 0  ;;  %s37_s22 = sshll.u32 %s2269_s5, 4  ;;  %s1766_s23 = smov [#allocation3]   ;;  %s38_s22 = int_to_ptr.hbm [resolvable:$true] %s37_s22 }
   0x4   :  { %s39_s24 = sshll.u32 %s1766_s23, 4  ;;  %s1767_s25 = smov 128   ;;  %s40_s24 = int_to_ptr.vmem [resolvable:$true] %s39_s24 }
   0x5   :  { %s1768_s26 = smov 8  }
   0x6   :  { %45 = dma.hbm_to_vmem [thread:$0]  %s38_s22, 20480, %s40_s24, [#allocation4], %s1767_s25, %s1767_s25, %s1768_s26  }
   0x7   :  { %1764 = dma.done.wait [#allocation4], 20480  }
   0x8   :  { %1765 = vsyncadd [#allocation4], 4294946816  ;;  %v83_v1 = vld [vmem:[%s2266_s2 + $0x18] sm:$0xff]  ;;  %v82_v2 = vld [vmem:[%s2266_s2 + $0x10] sm:$0xff]  ;;  %vm88_vm0 = vcmask 261120   ;;  %v1769_v10 = vmov 0.0  }
   0x9   :  { %v71_v3 = vld [vmem:[%s2267_s3 + $0x18] sm:$0xff]  ;;  %125 = vmatpush.msra.mxu0 %v83_v1  ;;  %v70_v4 = vld [vmem:[%s2267_s3 + $0x10] sm:$0xff]  ;;  %v81_v5 = vld [vmem:[%s2266_s2 + $0x8] sm:$0xff]  ;;  %s1770_s29 = smov 32  }
   0xa   :  { %169 = vmatpush.msra.mxu1 %v71_v3  ;;  %v80_v6 = vld [vmem:[%s2266_s2] sm:$0xff]  ;;  %v69_v7 = vld [vmem:[%s2267_s3 + $0x8] sm:$0xff]  ;;  %278 = vmatpush.msra.mxu2 %v71_v3  ;;  %v74_v1 = vld [vmem:[%s2264_s0 + $0x10] sm:$0xff] }
   0xb   :  { %387 = vmatpush.msra.mxu3 %v71_v3  ;;  %126 = vmatpush.msra.mxu0 %v82_v2  ;;  %v72_v8 = vld [vmem:[%s2264_s0] sm:$0xff]  ;;  %v73_v11 = vld [vmem:[%s2264_s0 + $0x8] sm:$0xff]  ;;  %v75_v2 = vld [vmem:[%s2264_s0 + $0x18] sm:$0xff] }
   0xc   :  { %170 = vmatpush.msra.mxu1 %v70_v4  ;;  %v68_v9 = vld [vmem:[%s2267_s3] sm:$0xff]  ;;  %279 = vmatpush.msra.mxu2 %v70_v4 }
   0xd   :  { %388 = vmatpush.msra.mxu3 %v70_v4  ;;  %127 = vmatpush.msra.mxu0 %v81_v5  ;;  %v1894_v12 = vld [vmem:[%s2268_s4] ss:$0 sm:$0xff]  ;;  %s1771_s4 = smov 64  }
   0xe   :  { %171 = vmatpush.msra.mxu1 %v69_v7  ;;  %280 = vmatpush.msra.mxu2 %v69_v7 }
   0xf   :  { %389 = vmatpush.msra.mxu3 %v69_v7  ;;  %128 = vmatpush.msra.mxu0 %v80_v6 }
  0x10   :  { %172 = vmatpush.msra.mxu1 %v68_v9  ;;  %1525 = vmatmul.msk.f32.vlgmr.msra.gmra.mxu0 %vm88_vm0, %v72_v8 }
  0x11   :  { %173 = vmatmul.f32.vlgmr.msra.gmra.mxu1 %v1769_v10  ;;  %281 = vmatpush.msra.mxu2 %v68_v9 }
  0x12   :  { %390 = vmatpush.msra.mxu3 %v68_v9  ;;  %496 = vmatpush.msrb.mxu1 %v71_v3 }
  0x14   :  { %497 = vmatpush.msrb.mxu1 %v70_v4 }
  0x16   :  { %498 = vmatpush.msrb.mxu1 %v69_v7 }
  0x18   :  { %1526 = vmatmul.msk.f32.gmra.mxu0 %vm88_vm0, %v73_v11  ;;  %499 = vmatpush.msrb.mxu1 %v68_v9 }
  0x19   :  { %176 = vmatmul.f32.gmra.mxu1 %v1769_v10 }
  0x20   :  { %1527 = vmatmul.msk.f32.gmra.mxu0 %vm88_vm0, %v74_v1 }
  0x28   :  { %1528 = vmatmul.msk.f32.gmra.mxu0 %vm88_vm0, %v75_v2 }
  0x8d   :  { %v130_v13 = vpop.f32.mrf.mxu0 }
  0x8e   :  { %v174_v14 = vpop.f32.mrf.mxu1  ;;  %v131_v15 = vadd.f32 %v1894_v12, %v130_v13 }
  0x90   :  { %v180_v16 = vadd.f32 %v174_v14, %v131_v15 }
  0x92   :  { %1672 = vtanh.f32 %v180_v16  ;;  %v1533_v23 = vmul.f32 -1.442695, %v180_v16 }
  0x95   :  { %v133_v17 = vpop.f32.mrf.mxu0 }
  0x96   :  { %v177_v18 = vpop.f32.mrf.mxu1  ;;  %v134_v19 = vadd.f32 %v1894_v12, %v133_v17 }
  0x98   :  { %v1673_v20 = vpop.eup %1672  ;;  %v181_v21 = vadd.f32 %v177_v18, %v134_v19 }
  0x99   :  { %226 = vrot.lane.b32.xlu0 %v1673_v20, %s1770_s29 }
  0x9a   :  { %1674 = vtanh.f32 %v181_v21  ;;  %v1534_v24 = vmul.f32 -1.442695, %v181_v21 }
  0x9b   :  { %1676 = vpow2.f32 %v1533_v23 }
  0x9c   :  { %1678 = vpow2.f32 %v1534_v24 }
  0x9d   :  { %v136_v5 = vpop.f32.mrf.mxu0 }
  0x9e   :  { %v137_v6 = vadd.f32 %v1894_v12, %v136_v5 }
  0xa0   :  { %v1675_v22 = vpop.eup %1674 }
  0xa1   :  { %228 = vrot.lane.b32.xlu0 %v1675_v22, %s1770_s29  ;;  %v1677_v25 = vpop.eup %1676 }
  0xa2   :  { %v188_v26 = vadd.f32 1.0, %v1677_v25  ;;  %v1679_v27 = vpop.eup %1678 }
  0xa3   :  { %v189_v28 = vadd.f32 1.0, %v1679_v27 }
  0xa4   :  { %1680 = vrcp.f32 %v188_v26  ;;  %v201_v37 = vand.u32 2147483648, %v188_v26  ;;  %vm195_vm2 = vweird.f32 %v188_v26  ;;  %v199_v38 = vand.u32 2147483647, %v188_v26 }
  0xa5   :  { %1682 = vrcp.f32 %v189_v28  ;;  %v216_v46 = vand.u32 2147483648, %v189_v28  ;;  %vm210_vm6 = vweird.f32 %v189_v28  ;;  %v214_v47 = vand.u32 2147483647, %v189_v28  ;;  %v139_v9 = vpop.f32.mrf.mxu0 }
  0xa6   :  { %v202_v41 = vor.u32 1.1754944e-38, %v201_v37  ;;  %vm200_vm4 = vcmp.eq.f32.partialorder %v199_v38, 8.507059e+37  ;;  %v140_v10 = vadd.f32 %v1894_v12, %v139_v9 }
  0xa7   :  { %v217_v49 = vor.u32 1.1754944e-38, %v216_v46  ;;  %vm215_vm8 = vcmp.eq.f32.partialorder %v214_v47, 8.507059e+37 }
  0xaa   :  { %v1681_v29 = vpop.eup %1680 }
  0xab   :  { %v191_v30 = vmul.f32 %v1681_v29, %v188_v26  ;;  %v1683_v32 = vpop.eup %1682  ;;  %vm196_vm1 = vweird.f32 %v1681_v29 }
  0xac   :  { %v206_v34 = vmul.f32 %v1683_v32, %v189_v28  ;;  %vm197_vm3 = vmor %vm195_vm2, %vm196_vm1  ;;  %vm211_vm5 = vweird.f32 %v1683_v32 }
  0xad   :  { %v192_v31 = vsub.f32 1.0, %v191_v30  ;;  %vm212_vm7 = vmor %vm210_vm6, %vm211_vm5 }
  0xae   :  { %v207_v36 = vsub.f32 1.0, %v206_v34 }
  0xaf   :  { %v193_v33 = vmul.f32 %v1681_v29, %v192_v31 }
  0xb0   :  { %v208_v40 = vmul.f32 %v1683_v32, %v207_v36 }
  0xb1   :  { %v194_v35 = vadd.f32 %v1681_v29, %v193_v33 }
  0xb2   :  { %v209_v45 = vadd.f32 %v1683_v32, %v208_v40 }
  0xb3   :  { %v198_v39 = vsel %vm197_vm3, %v1681_v29, %v194_v35 }
  0xb4   :  { %v203_v43 = vsel %vm200_vm4, %v202_v41, %v198_v39  ;;  %v213_v48 = vsel %vm212_vm7, %v1683_v32, %v209_v45 }
  0xb5   :  { %v218_v51 = vsel %vm215_vm8, %v217_v49, %v213_v48  ;;  %v222_v53 = vmul.f32 0.0, %v203_v43 }
  0xb6   :  { %v223_v56 = vmul.f32 0.0, %v218_v51 }
 0x10b   :  { %v227_v42 = vpop.permute.xlu0 %226 }
 0x10c   :  { %v232_v44 = vmul.f32 %v227_v42, %v203_v43 }
 0x10e   :  { %236 = vrot.lane.b32.xlu1 %v232_v44, %s1770_s29 }
 0x113   :  { %v229_v50 = vpop.permute.xlu0 %228 }
 0x114   :  { %v233_v52 = vmul.f32 %v229_v50, %v218_v51 }
 0x116   :  { %238 = vrot.lane.b32.xlu1 %v233_v52, %s1770_s29 }
 0x180   :  { %v237_v54 = vpop.permute.xlu1 %236 }
 0x181   :  { %v1902_v55 = vadd.f32 %v237_v54, %v222_v53 }
 0x183   :  { %1684 = vtanh.f32 %v1902_v55 }
 0x188   :  { %v239_v57 = vpop.permute.xlu1 %238 }
 0x189   :  { %v1685_v58 = vpop.eup %1684  ;;  %v1905_v59 = vadd.f32 %v239_v57, %v223_v56 }
 0x18a   :  { %248 = vrot.lane.b32.xlu2 %v1685_v58, %s1770_s29  ;;  %v76_v58 = vld [vmem:[%s2264_s0 + $0x20] sm:$0xff] }
 0x18b   :  { %1686 = vtanh.f32 %v1905_v59  ;;  %1529 = vmatmul.msk.f32.gmra.mxu0 %vm88_vm0, %v76_v58 }
 0x191   :  { %v1687_v60 = vpop.eup %1686 }
 0x192   :  { %250 = vrot.lane.b32.xlu2 %v1687_v60, %s1770_s29  ;;  %v77_v60 = vld [vmem:[%s2264_s0 + $0x28] sm:$0xff] }
 0x193   :  { %1530 = vmatmul.msk.f32.gmra.mxu0 %vm88_vm0, %v77_v60 }
 0x1e4   :  { %v249_v61 = vpop.permute.xlu2 %248 }
 0x1e5   :  { %v254_v62 = vmul.f32 %v249_v61, %v203_v43 }
 0x1e7   :  { %258 = vrot.lane.b32.xlu0 %v254_v62, %s1771_s4 }
 0x1ec   :  { %v251_v63 = vpop.permute.xlu2 %250 }
 0x1ed   :  { %v255_v0 = vmul.f32 %v251_v63, %v218_v51 }
 0x1ef   :  { %260 = vrot.lane.b32.xlu1 %v255_v0, %s1771_s4 }
 0x208   :  { %v142_v62 = vpop.f32.mrf.mxu0 }
 0x209   :  { %v143_v63 = vadd.f32 %v1894_v12, %v142_v62 }
 0x210   :  { %v145_v5 = vpop.f32.mrf.mxu0 }
 0x259   :  { %v1920_v3 = vpop.permute.xlu0 %258 }
 0x25a   :  { %1535 = vmatmul.msk.f32.vlgmr.msra.gmra.mxu2 %vm88_vm0, %v1920_v3 }
 0x261   :  { %v1924_v4 = vpop.permute.xlu1 %260 }
 0x262   :  { %1536 = vmatmul.msk.f32.gmra.mxu2 %vm88_vm0, %v1924_v4 }
 0x2dd   :  { %v283_v7 = vpop.f32.mrf.mxu2 }
 0x2de   :  { %v289_v8 = vadd.f32 %v283_v7, %v137_v6  ;;  %v146_v6 = vadd.f32 %v1894_v12, %v145_v5 }
 0x2e0   :  { %1688 = vtanh.f32 %v289_v8  ;;  %v1537_v16 = vmul.f32 -1.442695, %v289_v8 }
 0x2e5   :  { %v286_v11 = vpop.f32.mrf.mxu2 }
 0x2e6   :  { %v1689_v13 = vpop.eup %1688  ;;  %v290_v14 = vadd.f32 %v286_v11, %v140_v10 }
 0x2e7   :  { %335 = vrot.lane.b32.xlu2 %v1689_v13, %s1770_s29 }
 0x2e8   :  { %1690 = vtanh.f32 %v290_v14  ;;  %v1538_v22 = vmul.f32 -1.442695, %v290_v14 }
 0x2e9   :  { %1692 = vpow2.f32 %v1537_v16 }
 0x2ee   :  { %v1691_v15 = vpop.eup %1690 }
 0x2ef   :  { %337 = vrot.lane.b32.xlu0 %v1691_v15, %s1770_s29  ;;  %v1693_v17 = vpop.eup %1692 }
 0x2f0   :  { %v297_v18 = vadd.f32 1.0, %v1693_v17 }
 0x2f2   :  { %1694 = vrcp.f32 %v297_v18  ;;  %v310_v25 = vand.u32 2147483648, %v297_v18  ;;  %vm304_vm10 = vweird.f32 %v297_v18  ;;  %v308_v26 = vand.u32 2147483647, %v297_v18 }
 0x2f3   :  { %1696 = vpow2.f32 %v1538_v22 }
 0x2f4   :  { %v311_v29 = vor.u32 1.1754944e-38, %v310_v25  ;;  %vm309_vm12 = vcmp.eq.f32.partialorder %v308_v26, 8.507059e+37 }
 0x2f8   :  { %v1695_v19 = vpop.eup %1694 }
 0x2f9   :  { %v300_v20 = vmul.f32 %v1695_v19, %v297_v18  ;;  %vm305_vm9 = vweird.f32 %v1695_v19  ;;  %v1697_v27 = vpop.eup %1696 }
 0x2fa   :  { %vm306_vm11 = vmor %vm304_vm10, %vm305_vm9  ;;  %v298_v30 = vadd.f32 1.0, %v1697_v27 }
 0x2fb   :  { %v301_v21 = vsub.f32 1.0, %v300_v20 }
 0x2fc   :  { %1698 = vrcp.f32 %v298_v30  ;;  %v325_v39 = vand.u32 2147483648, %v298_v30  ;;  %vm319_vm14 = vweird.f32 %v298_v30  ;;  %v323_v40 = vand.u32 2147483647, %v298_v30 }
 0x2fd   :  { %v302_v23 = vmul.f32 %v1695_v19, %v301_v21 }
 0x2fe   :  { %v326_v42 = vor.u32 1.1754944e-38, %v325_v39  ;;  %vm324_vm1 = vcmp.eq.f32.partialorder %v323_v40, 8.507059e+37 }
 0x2ff   :  { %v303_v24 = vadd.f32 %v1695_v19, %v302_v23 }
 0x301   :  { %v307_v28 = vsel %vm306_vm11, %v1695_v19, %v303_v24 }
 0x302   :  { %v312_v31 = vsel %vm309_vm12, %v311_v29, %v307_v28  ;;  %v1699_v34 = vpop.eup %1698 }
 0x303   :  { %v315_v35 = vmul.f32 %v1699_v34, %v298_v30  ;;  %vm320_vm13 = vweird.f32 %v1699_v34  ;;  %v331_v46 = vmul.f32 %v312_v31, %v1902_v55 }
 0x304   :  { %vm321_vm15 = vmor %vm319_vm14, %vm320_vm13 }
 0x305   :  { %v316_v36 = vsub.f32 1.0, %v315_v35 }
 0x307   :  { %v317_v37 = vmul.f32 %v1699_v34, %v316_v36 }
 0x309   :  { %v318_v38 = vadd.f32 %v1699_v34, %v317_v37 }
 0x30b   :  { %v322_v41 = vsel %vm321_vm15, %v1699_v34, %v318_v38 }
 0x30c   :  { %v327_v44 = vsel %vm324_vm1, %v326_v42, %v322_v41 }
 0x30d   :  { %v332_v49 = vmul.f32 %v327_v44, %v1905_v59 }
 0x341   :  { %v336_v32 = vpop.permute.xlu2 %335 }
 0x342   :  { %v341_v33 = vmul.f32 %v336_v32, %v312_v31 }
 0x344   :  { %345 = vrot.lane.b32.xlu1 %v341_v33, %s1770_s29 }
 0x361   :  { %v338_v43 = vpop.permute.xlu0 %337 }
 0x362   :  { %v342_v45 = vmul.f32 %v338_v43, %v327_v44 }
 0x364   :  { %347 = vrot.lane.b32.xlu2 %v342_v45, %s1770_s29 }
 0x3b6   :  { %v346_v47 = vpop.permute.xlu1 %345 }
 0x3b7   :  { %v1935_v48 = vadd.f32 %v346_v47, %v331_v46 }
 0x3b9   :  { %1700 = vtanh.f32 %v1935_v48 }
 0x3be   :  { %v348_v50 = vpop.permute.xlu2 %347 }
 0x3bf   :  { %v1701_v51 = vpop.eup %1700  ;;  %v1939_v52 = vadd.f32 %v348_v50, %v332_v49 }
 0x3c0   :  { %357 = vrot.lane.b32.xlu0 %v1701_v51, %s1770_s29  ;;  %v78_v51 = vld [vmem:[%s2264_s0 + $0x30] sm:$0xff] }
 0x3c1   :  { %1702 = vtanh.f32 %v1939_v52  ;;  %1531 = vmatmul.msk.f32.gmra.mxu0 %vm88_vm0, %v78_v51 }
 0x3c7   :  { %v1703_v53 = vpop.eup %1702 }
 0x3c8   :  { %359 = vrot.lane.b32.xlu1 %v1703_v53, %s1770_s29 }
 0x432   :  { %v358_v54 = vpop.permute.xlu0 %357 }
 0x433   :  { %v363_v55 = vmul.f32 %v358_v54, %v312_v31  ;;  %v79_v54 = vld [vmem:[%s2264_s0 + $0x38] sm:$0xff] }
 0x434   :  { %1532 = vmatmul.msk.f32.gmra.mxu0 %vm88_vm0, %v79_v54 }
 0x435   :  { %367 = vrot.lane.b32.xlu2 %v363_v55, %s1771_s4 }
 0x43a   :  { %v360_v56 = vpop.permute.xlu1 %359 }
 0x43b   :  { %v364_v57 = vmul.f32 %v360_v56, %v327_v44 }
 0x43d   :  { %369 = vrot.lane.b32.xlu0 %v364_v57, %s1771_s4 }
 0x43e   :  { %v148_v57 = vpop.f32.mrf.mxu0 }
 0x43f   :  { %v149_v58 = vadd.f32 %v1894_v12, %v148_v57 }
 0x48f   :  { %v1950_v59 = vpop.permute.xlu2 %367 }
 0x490   :  { %1539 = vmatmul.msk.f32.vlgmr.msra.gmra.mxu3 %vm88_vm0, %v1950_v59 }
 0x4af   :  { %v1958_v61 = vpop.permute.xlu0 %369 }
 0x4b0   :  { %1540 = vmatmul.msk.f32.gmra.mxu3 %vm88_vm0, %v1958_v61 }
 0x513   :  { %v392_v0 = vpop.f32.mrf.mxu3 }
 0x514   :  { %v398_v1 = vadd.f32 %v392_v0, %v143_v63  ;;  %v151_v63 = vpop.f32.mrf.mxu0 }
 0x515   :  { %v152_v0 = vadd.f32 %v1894_v12, %v151_v63  ;;  %v1607_v63 = vld [vmem:[%s2265_s1 + $0x20] sm:$0xff]  }
 0x516   :  { %1704 = vtanh.f32 %v398_v1  ;;  %v1541_v10 = vmul.f32 -1.442695, %v398_v1 }
 0x51c   :  { %v1705_v2 = vpop.eup %1704 }
 0x51d   :  { %444 = vrot.lane.b32.xlu1 %v1705_v2, %s1770_s29 }
 0x533   :  { %v395_v7 = vpop.f32.mrf.mxu3 }
 0x534   :  { %v399_v8 = vadd.f32 %v395_v7, %v146_v6 }
 0x536   :  { %1706 = vtanh.f32 %v399_v8  ;;  %v1542_v11 = vmul.f32 -1.442695, %v399_v8 }
 0x537   :  { %1708 = vpow2.f32 %v1541_v10 }
 0x538   :  { %1710 = vpow2.f32 %v1542_v11 }
 0x53c   :  { %v1707_v9 = vpop.eup %1706 }
 0x53d   :  { %446 = vrot.lane.b32.xlu2 %v1707_v9, %s1770_s29  ;;  %v1709_v13 = vpop.eup %1708 }
 0x53e   :  { %v406_v14 = vadd.f32 1.0, %v1709_v13  ;;  %v1711_v15 = vpop.eup %1710 }
 0x53f   :  { %v407_v16 = vadd.f32 1.0, %v1711_v15 }
 0x540   :  { %1712 = vrcp.f32 %v406_v14  ;;  %v419_v25 = vand.u32 2147483648, %v406_v14  ;;  %vm413_vm3 = vweird.f32 %v406_v14  ;;  %v417_v26 = vand.u32 2147483647, %v406_v14 }
 0x541   :  { %1714 = vrcp.f32 %v407_v16  ;;  %v434_v34 = vand.u32 2147483648, %v407_v16  ;;  %vm428_vm7 = vweird.f32 %v407_v16  ;;  %v432_v35 = vand.u32 2147483647, %v407_v16 }
 0x542   :  { %v420_v29 = vor.u32 1.1754944e-38, %v419_v25  ;;  %vm418_vm5 = vcmp.eq.f32.partialorder %v417_v26, 8.507059e+37 }
 0x543   :  { %v435_v37 = vor.u32 1.1754944e-38, %v434_v34  ;;  %vm433_vm9 = vcmp.eq.f32.partialorder %v432_v35, 8.507059e+37 }
 0x546   :  { %v1713_v17 = vpop.eup %1712 }
 0x547   :  { %v409_v18 = vmul.f32 %v1713_v17, %v406_v14  ;;  %v1715_v20 = vpop.eup %1714  ;;  %vm414_vm2 = vweird.f32 %v1713_v17 }
 0x548   :  { %v424_v22 = vmul.f32 %v1715_v20, %v407_v16  ;;  %vm415_vm4 = vmor %vm413_vm3, %vm414_vm2  ;;  %vm429_vm6 = vweird.f32 %v1715_v20  ;;  %vm629_vm3 = vcmask 523264  }
 0x549   :  { %v410_v19 = vsub.f32 1.0, %v409_v18  ;;  %vm430_vm8 = vmor %vm428_vm7, %vm429_vm6  ;;  %vm1518_vm7 = vcmask 3072  }
 0x54a   :  { %v425_v24 = vsub.f32 1.0, %v424_v22 }
 0x54b   :  { %v411_v21 = vmul.f32 %v1713_v17, %v410_v19 }
 0x54c   :  { %v426_v28 = vmul.f32 %v1715_v20, %v425_v24 }
 0x54d   :  { %v412_v23 = vadd.f32 %v1713_v17, %v411_v21 }
 0x54e   :  { %v427_v33 = vadd.f32 %v1715_v20, %v426_v28 }
 0x54f   :  { %v416_v27 = vsel %vm415_vm4, %v1713_v17, %v412_v23  ;;  %vm895_vm4 = vcmask 785408  }
 0x550   :  { %v421_v31 = vsel %vm418_vm5, %v420_v29, %v416_v27  ;;  %v431_v36 = vsel %vm430_vm8, %v1715_v20, %v427_v33 }
 0x551   :  { %v436_v39 = vsel %vm433_vm9, %v435_v37, %v431_v36  ;;  %v440_v41 = vmul.f32 %v421_v31, %v1935_v48 }
 0x552   :  { %v441_v44 = vmul.f32 %v436_v39, %v1939_v52 }
 0x58f   :  { %v445_v30 = vpop.permute.xlu1 %444 }
 0x590   :  { %v450_v32 = vmul.f32 %v445_v30, %v421_v31 }
 0x592   :  { %454 = vrot.lane.b32.xlu0 %v450_v32, %s1770_s29 }
 0x597   :  { %v447_v38 = vpop.permute.xlu2 %446 }
 0x598   :  { %v451_v40 = vmul.f32 %v447_v38, %v436_v39 }
 0x59a   :  { %456 = vrot.lane.b32.xlu1 %v451_v40, %s1770_s29 }
 0x604   :  { %v455_v42 = vpop.permute.xlu0 %454 }
 0x605   :  { %v1969_v43 = vadd.f32 %v455_v42, %v440_v41 }
 0x607   :  { %1716 = vtanh.f32 %v1969_v43 }
 0x60c   :  { %v457_v45 = vpop.permute.xlu1 %456 }
 0x60d   :  { %v1717_v46 = vpop.eup %1716  ;;  %v1973_v47 = vadd.f32 %v457_v45, %v441_v44 }
 0x60e   :  { %466 = vrot.lane.b32.xlu2 %v1717_v46, %s1770_s29 }
 0x60f   :  { %1718 = vtanh.f32 %v1973_v47 }
 0x615   :  { %v1719_v49 = vpop.eup %1718 }
 0x616   :  { %468 = vrot.lane.b32.xlu0 %v1719_v49, %s1770_s29 }
 0x668   :  { %v467_v50 = vpop.permute.xlu2 %466 }
 0x669   :  { %v472_v48 = vmul.f32 %v467_v50, %v421_v31 }
 0x66b   :  { %476 = vrot.lane.b32.xlu1 %v472_v48, %s1771_s4 }
 0x688   :  { %v469_v52 = vpop.permute.xlu0 %468 }
 0x689   :  { %v473_v53 = vmul.f32 %v469_v52, %v436_v39 }
 0x68b   :  { %478 = vrot.lane.b32.xlu2 %v473_v53, %s1771_s4 }
 0x6dd   :  { %v1988_v55 = vpop.permute.xlu1 %476 }
 0x6de   :  { %1543 = vmatmul.msk.f32.vlgmr.msrb.gmra.mxu1 %vm88_vm0, %v1988_v55 }
 0x6e5   :  { %v1992_v56 = vpop.permute.xlu2 %478 }
 0x6e6   :  { %1544 = vmatmul.msk.f32.gmra.mxu1 %vm88_vm0, %v1992_v56 }
 0x75b   :  { %v501_v60 = vpop.f32.mrf.mxu1 }
 0x75c   :  { %v507_v62 = vadd.f32 %v501_v60, %v149_v58  ;;  %v1606_v58 = vld [vmem:[%s2265_s1 + $0x18] sm:$0xff]  }
 0x75d   :  { %v1586_v60 = vunpack.c.l.bf16 %v1606_v58 }
 0x75e   :  { %1720 = vtanh.f32 %v507_v62  ;;  %v1545_v7 = vmul.f32 -1.442695, %v507_v62  ;;  %v1587_v62 = vunpack.c.h.bf16 %v1606_v58  ;;  %v940_v58 = vld [vmem:[#allocation3 + $0x118] sm:$0xff] }
 0x75f   :  { %948 = vmatpush.msrb.mxu3 %v940_v58  ;;  %v910_v58 = vld [vmem:[#allocation3 + $0x30] sm:$0xff] }
 0x763   :  { %v504_v1 = vpop.f32.mrf.mxu1 }
 0x764   :  { %v1721_v2 = vpop.eup %1720  ;;  %v508_v5 = vadd.f32 %v504_v1, %v152_v0  ;;  %v1590_v0 = vunpack.c.l.bf16 %v1607_v63  ;;  %v1591_v1 = vunpack.c.h.bf16 %v1607_v63  ;;  %v938_v63 = vld [vmem:[#allocation3 + $0x108] sm:$0xff] }
 0x765   :  { %553 = vrot.lane.b32.xlu1 %v1721_v2, %s1770_s29  ;;  %v1608_v2 = vld [vmem:[%s2265_s1 + $0x28] sm:$0xff]  }
 0x766   :  { %1722 = vtanh.f32 %v508_v5  ;;  %v1546_v8 = vmul.f32 -1.442695, %v508_v5  ;;  %v1594_v5 = vunpack.c.l.bf16 %v1608_v2 }
 0x767   :  { %1724 = vpow2.f32 %v1545_v7  ;;  %v1609_v7 = vld [vmem:[%s2265_s1 + $0x30] sm:$0xff]  }
 0x768   :  { %1726 = vpow2.f32 %v1546_v8  ;;  %v1598_v8 = vunpack.c.l.bf16 %v1609_v7 }
 0x76c   :  { %v1723_v6 = vpop.eup %1722 }
 0x76d   :  { %555 = vrot.lane.b32.xlu0 %v1723_v6, %s1770_s29  ;;  %v1725_v9 = vpop.eup %1724  ;;  %v1595_v6 = vunpack.c.h.bf16 %v1608_v2  ;;  %v936_v2 = vld [vmem:[#allocation3 + $0xf8] sm:$0xff] }
 0x76e   :  { %v515_v10 = vadd.f32 1.0, %v1725_v9  ;;  %v1727_v11 = vpop.eup %1726  ;;  %v1599_v9 = vunpack.c.h.bf16 %v1609_v7  ;;  %v918_v7 = vld [vmem:[#allocation3 + $0x70] sm:$0xff] }
 0x76f   :  { %v516_v13 = vadd.f32 1.0, %v1727_v11 }
 0x770   :  { %1728 = vrcp.f32 %v515_v10  ;;  %v528_v21 = vand.u32 2147483648, %v515_v10  ;;  %vm522_vm11 = vweird.f32 %v515_v10  ;;  %v526_v22 = vand.u32 2147483647, %v515_v10 }
 0x771   :  { %1730 = vrcp.f32 %v516_v13  ;;  %v543_v30 = vand.u32 2147483648, %v516_v13  ;;  %vm537_vm15 = vweird.f32 %v516_v13  ;;  %v541_v31 = vand.u32 2147483647, %v516_v13 }
 0x772   :  { %v529_v25 = vor.u32 1.1754944e-38, %v528_v21  ;;  %vm527_vm13 = vcmp.eq.f32.partialorder %v526_v22, 8.507059e+37  ;;  %v942_v21 = vld [vmem:[#allocation3 + $0x128] sm:$0xff]  ;;  %v941_v22 = vld [vmem:[#allocation3 + $0x120] sm:$0xff] }
 0x773   :  { %v544_v33 = vor.u32 1.1754944e-38, %v543_v30  ;;  %vm542_vm2 = vcmp.eq.f32.partialorder %v541_v31, 8.507059e+37 }
 0x776   :  { %v1729_v14 = vpop.eup %1728 }
 0x777   :  { %v518_v12 = vmul.f32 %v1729_v14, %v515_v10  ;;  %v1731_v16 = vpop.eup %1730  ;;  %vm523_vm10 = vweird.f32 %v1729_v14  ;;  %v1610_v10 = vld [vmem:[%s2265_s1 + $0x38] sm:$0xff]  }
 0x778   :  { %v533_v18 = vmul.f32 %v1731_v16, %v516_v13  ;;  %vm524_vm12 = vmor %vm522_vm11, %vm523_vm10  ;;  %vm538_vm14 = vweird.f32 %v1731_v16  ;;  %v1602_v11 = vunpack.c.l.bf16 %v1610_v10  ;;  %v1603_v13 = vunpack.c.h.bf16 %v1610_v10  ;;  %v933_v10 = vld [vmem:[#allocation3 + $0xe0] sm:$0xff] }
 0x779   :  { %v519_v15 = vsub.f32 1.0, %v518_v12  ;;  %vm539_vm1 = vmor %vm537_vm15, %vm538_vm14 }
 0x77a   :  { %v534_v20 = vsub.f32 1.0, %v533_v18  ;;  %v944_v18 = vld [vmem:[#allocation3 + $0x138] sm:$0xff] }
 0x77b   :  { %v520_v17 = vmul.f32 %v1729_v14, %v519_v15  ;;  %980 = vmatpush.msra.mxu1 %v944_v18  ;;  %v931_v18 = vld [vmem:[#allocation3 + $0xd0] sm:$0xff] }
 0x77c   :  { %v535_v24 = vmul.f32 %v1731_v16, %v534_v20 }
 0x77d   :  { %v521_v19 = vadd.f32 %v1729_v14, %v520_v17 }
 0x77e   :  { %v536_v29 = vadd.f32 %v1731_v16, %v535_v24  ;;  %v922_v24 = vld [vmem:[#allocation3 + $0x90] sm:$0xff] }
 0x77f   :  { %v525_v23 = vsel %vm524_vm12, %v1729_v14, %v521_v19  ;;  %v943_v19 = vld [vmem:[#allocation3 + $0x130] sm:$0xff] }
 0x780   :  { %v530_v27 = vsel %vm527_vm13, %v529_v25, %v525_v23  ;;  %v540_v32 = vsel %vm539_vm1, %v1731_v16, %v536_v29  ;;  %981 = vmatpush.msra.mxu1 %v943_v19  ;;  %v923_v23 = vld [vmem:[#allocation3 + $0x98] sm:$0xff]  ;;  %v930_v19 = vld [vmem:[#allocation3 + $0xc8] sm:$0xff] }
 0x781   :  { %v545_v35 = vsel %vm542_vm2, %v544_v33, %v540_v32  ;;  %v549_v41 = vmul.f32 %v530_v27, %v1969_v43  ;;  %v1573_v43 = vld [vmem:[%s2265_s1] sm:$0xff]  }
 0x782   :  { %v550_v37 = vmul.f32 %v545_v35, %v1973_v47  ;;  %v1574_v54 = vunpack.c.l.bf16 %v1573_v43  ;;  %v1575_v57 = vunpack.c.h.bf16 %v1573_v43  ;;  %982 = vmatpush.msra.mxu1 %v942_v21 }
 0x784   :  { %983 = vmatpush.msra.mxu1 %v941_v22  ;;  %v929_v22 = vld [vmem:[#allocation3 + $0xc0] sm:$0xff] }
 0x786   :  { %1023 = vmatpush.msrb.mxu1 %v923_v23 }
 0x788   :  { %1024 = vmatpush.msrb.mxu1 %v922_v24 }
 0x7d7   :  { %v554_v26 = vpop.permute.xlu1 %553 }
 0x7d8   :  { %v559_v28 = vmul.f32 %v554_v26, %v530_v27  ;;  %v921_v26 = vld [vmem:[#allocation3 + $0x88] sm:$0xff] }
 0x7d9   :  { %1025 = vmatpush.msrb.mxu1 %v921_v26 }
 0x7da   :  { %563 = vrot.lane.b32.xlu0 %v559_v28, %s1770_s29 }
 0x7df   :  { %v556_v34 = vpop.permute.xlu0 %555 }
 0x7e0   :  { %v560_v36 = vmul.f32 %v556_v34, %v545_v35 }
 0x7e2   :  { %565 = vrot.lane.b32.xlu2 %v560_v36, %s1770_s29  ;;  %v1051_v36 = vld [vmem:[#allocation3 + $0x1d8] sm:$0xff] }
 0x83c   :  { %v566_v38 = vpop.permute.xlu2 %565 }
 0x83d   :  { %v570_v39 = vadd.f32 %v566_v38, %v550_v37  ;;  %v1050_v37 = vld [vmem:[#allocation3 + $0x1d0] sm:$0xff] }
 0x83f   :  { %1732 = vtanh.f32 %v570_v39 }
 0x845   :  { %v1733_v40 = vpop.eup %1732 }
 0x846   :  { %577 = vrot.lane.b32.xlu1 %v1733_v40, %s1770_s29  ;;  %v1049_v40 = vld [vmem:[#allocation3 + $0x1c8] sm:$0xff] }
 0x84c   :  { %v564_v42 = vpop.permute.xlu0 %563 }
 0x84d   :  { %v569_v44 = vadd.f32 %v564_v42, %v549_v41 }
 0x84f   :  { %1734 = vtanh.f32 %v569_v44 }
 0x855   :  { %v1735_v45 = vpop.eup %1734 }
 0x856   :  { %575 = vrot.lane.b32.xlu2 %v1735_v45, %s1770_s29 }
 0x8b0   :  { %v576_v46 = vpop.permute.xlu2 %575 }
 0x8b1   :  { %v581_v50 = vmul.f32 %v576_v46, %v530_v27  ;;  %v920_v27 = vld [vmem:[#allocation3 + $0x80] sm:$0xff] }
 0x8b2   :  { %1026 = vmatpush.msrb.mxu1 %v920_v27 }
 0x8b8   :  { %v578_v49 = vpop.permute.xlu1 %577 }
 0x8b9   :  { %v582_v48 = vmul.f32 %v578_v49, %v545_v35  ;;  %v1048_v49 = vld [vmem:[#allocation3 + $0x1c0] sm:$0xff] }
 0x8bb   :  { %v1618_v51 = vpack.i.bf16 %v581_v50, %v582_v48 }
 0x8bd   :  { %1619 = vrot.lane.b32.xlu0 %v1618_v51, %s1771_s4 }
 0x92f   :  { %v1620_v47 = vpop.permute.xlu0 %1619 }
 0x930   :  { %v1621_v52 = vunpack.i.l.bf16 %v1620_v47  ;;  %v1622_v53 = vunpack.i.h.bf16 %v1620_v47 }
 0x932   :  { %686 = vmatpush.msrb.mxu2 %v1621_v52 }
 0x934   :  { %687 = vmatpush.msrb.mxu2 %v1622_v53 }
 0x936   :  { %688 = vmatpush.msrb.mxu2 %v1992_v56 }
 0x938   :  { %689 = vmatpush.msrb.mxu2 %v1988_v55 }
 0x93a   :  { %690 = vmatpush.msrb.mxu2 %v1958_v61  ;;  %v1604_v61 = vld [vmem:[%s2265_s1 + $0x8] sm:$0xff]  }
 0x93b   :  { %v1578_v55 = vunpack.c.l.bf16 %v1604_v61  ;;  %v1579_v56 = vunpack.c.h.bf16 %v1604_v61 }
 0x93c   :  { %691 = vmatpush.msrb.mxu2 %v1950_v59 }
 0x93e   :  { %692 = vmatpush.msrb.mxu2 %v1924_v4  ;;  %v1605_v4 = vld [vmem:[%s2265_s1 + $0x10] sm:$0xff]   ;;  %s1772_s1 = smov 96  }
 0x93f   :  { %v1583_v59 = vunpack.c.h.bf16 %v1605_v4 }
 0x940   :  { %693 = vmatpush.msrb.mxu2 %v1920_v3  ;;  %v1582_v3 = vunpack.c.l.bf16 %v1605_v4 }
 0x941   :  { %1547 = vmatmul.msk.f32.vlgmr.msrb.gmra.mxu2 %vm629_vm3, %v1574_v54 }
 0x949   :  { %1548 = vmatmul.msk.f32.gmra.mxu2 %vm629_vm3, %v1575_v57 }
 0x951   :  { %1549 = vmatmul.msk.f32.gmra.mxu2 %vm629_vm3, %v1578_v55 }
 0x959   :  { %1550 = vmatmul.msk.f32.gmra.mxu2 %vm629_vm3, %v1579_v56 }
 0x961   :  { %1551 = vmatmul.msk.f32.gmra.mxu2 %vm629_vm3, %v1582_v3 }
 0x969   :  { %1552 = vmatmul.msk.f32.gmra.mxu2 %vm629_vm3, %v1583_v59 }
 0x971   :  { %1553 = vmatmul.msk.f32.gmra.mxu2 %vm629_vm3, %v1586_v60 }
 0x979   :  { %1554 = vmatmul.msk.f32.gmra.mxu2 %vm629_vm3, %v1587_v62  ;;  %v939_v62 = vld [vmem:[#allocation3 + $0x110] sm:$0xff] }
 0x97a   :  { %949 = vmatpush.msrb.mxu3 %v939_v62  ;;  %v1035_v62 = vld [vmem:[#allocation3 + $0x158] sm:$0xff] }
 0x97c   :  { %950 = vmatpush.msrb.mxu3 %v938_v63  ;;  %v909_v63 = vld [vmem:[#allocation3 + $0x28] sm:$0xff] }
 0x981   :  { %1555 = vmatmul.msk.f32.gmra.mxu2 %vm629_vm3, %v1590_v0  ;;  %v937_v0 = vld [vmem:[#allocation3 + $0x100] sm:$0xff] }
 0x982   :  { %951 = vmatpush.msrb.mxu3 %v937_v0  ;;  %v1034_v0 = vld [vmem:[#allocation3 + $0x150] sm:$0xff] }
 0x984   :  { %952 = vmatpush.msrb.mxu3 %v936_v2  ;;  %v1111_v2 = vld [vmem:[#allocation3 + $0x250] sm:$0xff] }
 0x989   :  { %1556 = vmatmul.msk.f32.gmra.mxu2 %vm629_vm3, %v1591_v1 }
 0x991   :  { %1557 = vmatmul.msk.f32.gmra.mxu2 %vm629_vm3, %v1594_v5  ;;  %v935_v5 = vld [vmem:[#allocation3 + $0xf0] sm:$0xff] }
 0x992   :  { %953 = vmatpush.msrb.mxu3 %v935_v5  ;;  %v908_v5 = vld [vmem:[#allocation3 + $0x20] sm:$0xff] }
 0x999   :  { %1558 = vmatmul.msk.f32.gmra.mxu2 %vm629_vm3, %v1595_v6  ;;  %v919_v6 = vld [vmem:[#allocation3 + $0x78] sm:$0xff] }
 0x99a   :  { %991 = vmatpush.msrb.mxu0 %v919_v6  ;;  %v1033_v6 = vld [vmem:[#allocation3 + $0x148] sm:$0xff] }
 0x99c   :  { %992 = vmatpush.msrb.mxu0 %v918_v7  ;;  %v1110_v7 = vld [vmem:[#allocation3 + $0x248] sm:$0xff] }
 0x9a1   :  { %1559 = vmatmul.msk.f32.gmra.mxu2 %vm629_vm3, %v1598_v8 }
 0x9a9   :  { %1560 = vmatmul.msk.f32.gmra.mxu2 %vm629_vm3, %v1599_v9  ;;  %v934_v9 = vld [vmem:[#allocation3 + $0xe8] sm:$0xff] }
 0x9aa   :  { %954 = vmatpush.msrb.mxu3 %v934_v9  ;;  %v1032_v9 = vld [vmem:[#allocation3 + $0x140] sm:$0xff] }
 0x9ac   :  { %955 = vmatpush.msrb.mxu3 %v933_v10  ;;  %v1109_v10 = vld [vmem:[#allocation3 + $0x240] sm:$0xff] }
 0x9b1   :  { %1561 = vmatmul.msk.f32.gmra.mxu2 %vm629_vm3, %v1602_v11 }
 0x9b9   :  { %1562 = vmatmul.msk.f32.gmra.mxu2 %vm629_vm3, %v1603_v13  ;;  %v932_v13 = vld [vmem:[#allocation3 + $0xd8] sm:$0xff] }
 0x9ba   :  { %956 = vmatpush.msrb.mxu3 %v932_v13  ;;  %v906_v13 = vld [vmem:[#allocation3 + $0x10] sm:$0xff] }
 0x9bc   :  { %957 = vmatpush.msrb.mxu3 %v931_v18  ;;  %v1108_v18 = vld [vmem:[#allocation3 + $0x238] sm:$0xff] }
 0x9be   :  { %958 = vmatpush.msrb.mxu3 %v930_v19  ;;  %v905_v19 = vld [vmem:[#allocation3 + $0x8] sm:$0xff] }
 0x9c0   :  { %959 = vmatpush.msrb.mxu3 %v929_v22  ;;  %v904_v22 = vld [vmem:[#allocation3] sm:$0xff] }
 0x9c4   :  { %v2053_v14 = vpop.f32.mrf.mxu2 }
 0x9cc   :  { %v2055_v12 = vpop.f32.mrf.mxu2 }
 0x9d4   :  { %v2057_v15 = vpop.f32.mrf.mxu2 }
 0x9dc   :  { %v2059_v16 = vpop.f32.mrf.mxu2 }
 0x9e4   :  { %v2061_v17 = vpop.f32.mrf.mxu2 }
 0x9ec   :  { %v2063_v20 = vpop.f32.mrf.mxu2 }
 0x9f4   :  { %v2065_v25 = vpop.f32.mrf.mxu2 }
 0x9fc   :  { %v2067_v28 = vpop.f32.mrf.mxu2 }
 0xa04   :  { %v719_v29 = vpop.f32.mrf.mxu2 }
 0xa05   :  { %v743_v38 = vsub.f32 %v2053_v14, %v719_v29  ;;  %v767_v39 = vadd.f32 %v719_v29, %v2053_v14  ;;  %v759_v42 = vmul.f32 %v719_v29, %v2053_v14 }
 0xa07   :  { %v775_v50 = vmul.f32 0.5, %v767_v39  ;;  %v751_v51 = vand.u32 2147483647, %v743_v38 }
 0xa0c   :  { %v722_v30 = vpop.f32.mrf.mxu2 }
 0xa0d   :  { %v768_v31 = vadd.f32 %v722_v30, %v2055_v12  ;;  %825 = vrot.lane.b32.xlu2 %v722_v30, %s1771_s4  ;;  %v760_v32 = vmul.f32 %v722_v30, %v2055_v12  ;;  %v744_v33 = vsub.f32 %v2055_v12, %v722_v30  ;;  %v928_v30 = vld [vmem:[#allocation3 + $0xb8] sm:$0xff] }
 0xa0e   :  { %960 = vmatpush.msrb.mxu3 %v928_v30  ;;  %v1104_v30 = vld [vmem:[#allocation3 + $0x218] sm:$0xff] }
 0xa0f   :  { %v776_v34 = vmul.f32 0.5, %v768_v31  ;;  %857 = vrot.lane.b32.xlu0 %v760_v32, %s1772_s1  ;;  %v752_v35 = vand.u32 2147483647, %v744_v33 }
 0xa11   :  { %1563 = vmatmul.msk.f32.vlgmr.msra.gmra.mxu1 %vm88_vm0, %v776_v34  ;;  %793 = vrot.lane.b32.xlu1 %v752_v35, %s1770_s29  ;;  %v927_v34 = vld [vmem:[#allocation3 + $0xb0] sm:$0xff] }
 0xa12   :  { %1087 = vmatpush.msra.mxu1 %v1051_v36  ;;  %v926_v36 = vld [vmem:[#allocation3 + $0xa8] sm:$0xff]  ;;  %961 = vmatpush.msrb.mxu3 %v927_v34 }
 0xa13   :  { %v1102_v34 = vld [vmem:[#allocation3 + $0x208] sm:$0xff] }
 0xa14   :  { %v725_v41 = vpop.f32.mrf.mxu2  ;;  %1088 = vmatpush.msra.mxu1 %v1050_v37  ;;  %v925_v37 = vld [vmem:[#allocation3 + $0xa0] sm:$0xff]  ;;  %962 = vmatpush.msrb.mxu3 %v926_v36  ;;  %v1100_v36 = vld [vmem:[#allocation3 + $0x1f8] sm:$0xff] }
 0xa15   :  { %v745_v44 = vsub.f32 %v2057_v15, %v725_v41  ;;  %v761_v45 = vmul.f32 %v725_v41, %v2057_v15  ;;  %v1623_v46 = vpack.i.bf16 %v725_v41, %v719_v29  ;;  %v769_v53 = vadd.f32 %v725_v41, %v2057_v15  ;;  %v1046_v41 = vld [vmem:[#allocation3 + $0x1b0] sm:$0xff] }
 0xa16   :  { %1089 = vmatpush.msra.mxu1 %v1049_v40  ;;  %963 = vmatpush.msrb.mxu3 %v925_v37  ;;  %v1047_v40 = vld [vmem:[#allocation3 + $0x1b8] sm:$0xff]  ;;  %v1099_v37 = vld [vmem:[#allocation3 + $0x1f0] sm:$0xff] }
 0xa17   :  { %1624 = vrot.lane.b32.xlu2 %v1623_v46, %s1771_s4  ;;  %v1628_v48 = vpack.i.bf16 %v761_v45, %v759_v42  ;;  %v753_v47 = vand.u32 2147483647, %v745_v44  ;;  %v777_v54 = vmul.f32 0.5, %v769_v53  ;;  %v917_v42 = vld [vmem:[#allocation3 + $0x68] sm:$0xff]  ;;  %v916_v44 = vld [vmem:[#allocation3 + $0x60] sm:$0xff]  ;;  %v914_v53 = vld [vmem:[#allocation3 + $0x50] sm:$0xff] }
 0xa18   :  { %1090 = vmatpush.msra.mxu1 %v1048_v49  ;;  %1055 = vmatpush.msra.mxu3 %v1047_v40  ;;  %v1045_v46 = vld [vmem:[#allocation3 + $0x1a8] sm:$0xff]  ;;  %v1044_v49 = vld [vmem:[#allocation3 + $0x1a0] sm:$0xff]  ;;  %v1246_v40 = vld [vmem:[#allocation3 + $0x3b8] sm:$0xff] }
 0xa19   :  { %1564 = vmatmul.msk.f32.vlgmr.msrb.gmra.mxu1 %vm88_vm0, %v775_v50  ;;  %1629 = vrot.lane.b32.xlu0 %v1628_v48, %s1772_s1  ;;  %v1633_v52 = vpack.i.bf16 %v753_v47, %v751_v51  ;;  %v1043_v50 = vld [vmem:[#allocation3 + $0x198] sm:$0xff]  ;;  %v1042_v48 = vld [vmem:[#allocation3 + $0x190] sm:$0xff]  ;;  %v1041_v47 = vld [vmem:[#allocation3 + $0x188] sm:$0xff] }
 0xa1a   :  { %993 = vmatpush.msrb.mxu0 %v917_v42  ;;  %1056 = vmatpush.msra.mxu3 %v1046_v41  ;;  %v915_v51 = vld [vmem:[#allocation3 + $0x58] sm:$0xff]  ;;  %v1245_v41 = vld [vmem:[#allocation3 + $0x3b0] sm:$0xff] }
 0xa1b   :  { %1634 = vrot.lane.b32.xlu1 %v1633_v52, %s1770_s29  ;;  %v1040_v52 = vld [vmem:[#allocation3 + $0x180] sm:$0xff] }
 0xa1c   :  { %v2086_v43 = vpop.f32.mrf.mxu2  ;;  %994 = vmatpush.msrb.mxu0 %v916_v44  ;;  %1057 = vmatpush.msra.mxu3 %v1045_v46  ;;  %v1244_v46 = vld [vmem:[#allocation3 + $0x3a8] sm:$0xff] }
 0xa1d   :  { %v746_v57 = vsub.f32 %v2059_v16, %v2086_v43  ;;  %v762_v8 = vmul.f32 %v2086_v43, %v2059_v16 }
 0xa1e   :  { %1058 = vmatpush.msra.mxu3 %v1044_v49  ;;  %995 = vmatpush.msrb.mxu0 %v915_v51 }
 0xa1f   :  { %v754_v3 = vand.u32 2147483647, %v746_v57  ;;  %v1039_v57 = vld [vmem:[#allocation3 + $0x178] sm:$0xff] }
 0xa20   :  { %1059 = vmatpush.msra.mxu3 %v1043_v50  ;;  %996 = vmatpush.msrb.mxu0 %v914_v53  ;;  %v1175_v53 = vld [vmem:[#allocation3 + $0x2e8] sm:$0xff] }
 0xa21   :  { %1565 = vmatmul.msk.f32.vlgmr.msra.gmra.mxu1 %vm88_vm0, %v777_v54  ;;  %v913_v54 = vld [vmem:[#allocation3 + $0x48] sm:$0xff] }
 0xa22   :  { %1060 = vmatpush.msra.mxu3 %v1042_v48  ;;  %997 = vmatpush.msrb.mxu0 %v913_v54  ;;  %v1177_v48 = vld [vmem:[#allocation3 + $0x2f8] sm:$0xff]  ;;  %v1174_v54 = vld [vmem:[#allocation3 + $0x2e0] sm:$0xff] }
 0xa24   :  { %v2091_v61 = vpop.f32.mrf.mxu2  ;;  %1061 = vmatpush.msra.mxu3 %v1041_v47  ;;  %v1243_v47 = vld [vmem:[#allocation3 + $0x3a0] sm:$0xff] }
 0xa25   :  { %v747_v55 = vsub.f32 %v2061_v17, %v2091_v61  ;;  %v763_v56 = vmul.f32 %v2091_v61, %v2061_v17  ;;  %v1638_v4 = vpack.i.bf16 %v2086_v43, %v2091_v61 }
 0xa26   :  { %1062 = vmatpush.msra.mxu3 %v1040_v52  ;;  %v1176_v52 = vld [vmem:[#allocation3 + $0x2f0] sm:$0xff] }
 0xa27   :  { %863 = vrot.lane.b32.xlu0 %v763_v56, %s1772_s1  ;;  %1639 = vrot.lane.b32.xlu2 %v1638_v4, %s1771_s4  ;;  %v755_v59 = vand.u32 2147483647, %v747_v55  ;;  %v912_v55 = vld [vmem:[#allocation3 + $0x40] sm:$0xff]  ;;  %v1112_v56 = vld [vmem:[#allocation3 + $0x258] sm:$0xff]  ;;  %v1038_v4 = vld [vmem:[#allocation3 + $0x170] sm:$0xff] }
 0xa28   :  { %1120 = vmatpush.msrb.mxu1 %v1112_v56  ;;  %1063 = vmatpush.msra.mxu3 %v1039_v57  ;;  %v1173_v56 = vld [vmem:[#allocation3 + $0x2d8] sm:$0xff] }
 0xa29   :  { %v1643_v60 = vpack.i.bf16 %v754_v3, %v755_v59  ;;  %v911_v3 = vld [vmem:[#allocation3 + $0x38] sm:$0xff]  ;;  %998 = vmatpush.msrb.mxu0 %v912_v55  ;;  %v1037_v59 = vld [vmem:[#allocation3 + $0x168] sm:$0xff] }
 0xa2a   :  { %1064 = vmatpush.msra.mxu3 %v1038_v4  ;;  %1121 = vmatpush.msrb.mxu1 %v1111_v2 }
 0xa2b   :  { %1644 = vrot.lane.b32.xlu1 %v1643_v60, %s1770_s29  ;;  %999 = vmatpush.msrb.mxu0 %v911_v3  ;;  %v1036_v60 = vld [vmem:[#allocation3 + $0x160] sm:$0xff] }
 0xa2c   :  { %v2102_v1 = vpop.f32.mrf.mxu2  ;;  %1065 = vmatpush.msra.mxu3 %v1037_v59  ;;  %1122 = vmatpush.msrb.mxu1 %v1110_v7  ;;  %v1171_v7 = vld [vmem:[#allocation3 + $0x2c8] sm:$0xff] }
 0xa2d   :  { %v748_v21 = vsub.f32 %v2063_v20, %v2102_v1  ;;  %v764_v24 = vmul.f32 %v2102_v1, %v2063_v20  ;;  %1000 = vmatpush.msrb.mxu0 %v910_v58 }
 0xa2e   :  { %1066 = vmatpush.msra.mxu3 %v1036_v60  ;;  %1123 = vmatpush.msrb.mxu1 %v1109_v10  ;;  %v1172_v60 = vld [vmem:[#allocation3 + $0x2d0] sm:$0xff] }
 0xa2f   :  { %v756_v32 = vand.u32 2147483647, %v748_v21  ;;  %1001 = vmatpush.msrb.mxu0 %v909_v63  ;;  %v1107_v21 = vld [vmem:[#allocation3 + $0x230] sm:$0xff] }
 0xa30   :  { %1067 = vmatpush.msra.mxu3 %v1035_v62  ;;  %1124 = vmatpush.msrb.mxu1 %v1108_v18  ;;  %v1180_v18 = vld [vmem:[#allocation3 + $0x310] sm:$0xff] }
 0xa31   :  { %1002 = vmatpush.msrb.mxu0 %v908_v5 }
 0xa32   :  { %1068 = vmatpush.msra.mxu3 %v1034_v0  ;;  %1125 = vmatpush.msrb.mxu1 %v1107_v21  ;;  %v1168_v21 = vld [vmem:[#allocation3 + $0x2b0] sm:$0xff] }
 0xa33   :  { %861 = vrot.lane.b32.xlu1 %v762_v8, %s1772_s1  ;;  %v907_v8 = vld [vmem:[#allocation3 + $0x18] sm:$0xff] }
 0xa34   :  { %v2107_v11 = vpop.f32.mrf.mxu2  ;;  %1069 = vmatpush.msra.mxu3 %v1033_v6  ;;  %1003 = vmatpush.msrb.mxu0 %v907_v8  ;;  %v1181_v8 = vld [vmem:[#allocation3 + $0x318] sm:$0xff] }
 0xa35   :  { %v749_v38 = vsub.f32 %v2065_v25, %v2107_v11  ;;  %v765_v39 = vmul.f32 %v2107_v11, %v2065_v25 }
 0xa36   :  { %1070 = vmatpush.msra.mxu3 %v1032_v9  ;;  %1004 = vmatpush.msrb.mxu0 %v906_v13  ;;  %v1170_v13 = vld [vmem:[#allocation3 + $0x2c0] sm:$0xff] }
 0xa37   :  { %v757_v45 = vand.u32 2147483647, %v749_v38  ;;  %v1098_v38 = vld [vmem:[#allocation3 + $0x1e8] sm:$0xff] }
 0xa38   :  { %1005 = vmatpush.msrb.mxu0 %v905_v19  ;;  %v1179_v19 = vld [vmem:[#allocation3 + $0x308] sm:$0xff] }
 0xa3a   :  { %1006 = vmatpush.msrb.mxu0 %v904_v22  ;;  %v1178_v22 = vld [vmem:[#allocation3 + $0x300] sm:$0xff] }
 0xa3c   :  { %v2111_v23 = vpop.f32.mrf.mxu2 }
 0xa3d   :  { %v750_v26 = vsub.f32 %v2067_v28, %v2111_v23  ;;  %v766_v27 = vmul.f32 %v2111_v23, %v2067_v28  ;;  %v1648_v29 = vpack.i.bf16 %v2111_v23, %v2102_v1 }
 0xa3f   :  { %1649 = vrot.lane.b32.xlu0 %v1648_v29, %s1771_s4  ;;  %v1653_v31 = vpack.i.bf16 %v766_v27, %v764_v24  ;;  %v758_v33 = vand.u32 2147483647, %v750_v26  ;;  %v1106_v24 = vld [vmem:[#allocation3 + $0x228] sm:$0xff]  ;;  %v1116_v26 = vld [vmem:[#allocation3 + $0x278] sm:$0xff]  ;;  %v1105_v27 = vld [vmem:[#allocation3 + $0x220] sm:$0xff] }
 0xa40   :  { %1126 = vmatpush.msrb.mxu1 %v1106_v24  ;;  %1152 = vmatpush.msra.mxu0 %v1116_v26  ;;  %v1115_v29 = vld [vmem:[#allocation3 + $0x270] sm:$0xff]  ;;  %v1167_v26 = vld [vmem:[#allocation3 + $0x2a8] sm:$0xff] }
 0xa41   :  { %1654 = vrot.lane.b32.xlu1 %v1653_v31, %s1772_s1  ;;  %v1658_v35 = vpack.i.bf16 %v758_v33, %v756_v32  ;;  %v1114_v31 = vld [vmem:[#allocation3 + $0x268] sm:$0xff]  ;;  %v1103_v32 = vld [vmem:[#allocation3 + $0x210] sm:$0xff]  ;;  %v1113_v33 = vld [vmem:[#allocation3 + $0x260] sm:$0xff] }
 0xa42   :  { %1127 = vmatpush.msrb.mxu1 %v1105_v27  ;;  %1153 = vmatpush.msra.mxu0 %v1115_v29  ;;  %v1242_v27 = vld [vmem:[#allocation3 + $0x398] sm:$0xff]  ;;  %v1166_v29 = vld [vmem:[#allocation3 + $0x2a0] sm:$0xff] }
 0xa43   :  { %1659 = vrot.lane.b32.xlu2 %v1658_v35, %s1770_s29  ;;  %v1101_v35 = vld [vmem:[#allocation3 + $0x200] sm:$0xff] }
 0xa44   :  { %1128 = vmatpush.msrb.mxu1 %v1104_v30  ;;  %1154 = vmatpush.msra.mxu0 %v1114_v31  ;;  %v1241_v30 = vld [vmem:[#allocation3 + $0x390] sm:$0xff] }
 0xa46   :  { %1129 = vmatpush.msrb.mxu1 %v1103_v32  ;;  %1155 = vmatpush.msra.mxu0 %v1113_v33  ;;  %v1165_v32 = vld [vmem:[#allocation3 + $0x298] sm:$0xff]  ;;  %v1240_v33 = vld [vmem:[#allocation3 + $0x388] sm:$0xff] }
 0xa47   :  { %835 = vrot.lane.b32.xlu0 %v2107_v11, %s1771_s4 }
 0xa48   :  { %1130 = vmatpush.msrb.mxu1 %v1102_v34 }
 0xa49   :  { %867 = vrot.lane.b32.xlu1 %v765_v39, %s1772_s1  ;;  %v1097_v39 = vld [vmem:[#allocation3 + $0x1e0] sm:$0xff] }
 0xa4a   :  { %1131 = vmatpush.msrb.mxu1 %v1101_v35 }
 0xa4b   :  { %803 = vrot.lane.b32.xlu2 %v757_v45, %s1770_s29 }
 0xa4c   :  { %1132 = vmatpush.msrb.mxu1 %v1100_v36 }
 0xa4e   :  { %1133 = vmatpush.msrb.mxu1 %v1099_v37  ;;  %v1164_v37 = vld [vmem:[#allocation3 + $0x290] sm:$0xff] }
 0xa50   :  { %1134 = vmatpush.msrb.mxu1 %v1098_v38  ;;  %v1239_v38 = vld [vmem:[#allocation3 + $0x380] sm:$0xff] }
 0xa52   :  { %1135 = vmatpush.msrb.mxu1 %v1097_v39 }
 0xa54   :  { %1282 = vmatpush.msra.mxu1 %v1246_v40 }
 0xa56   :  { %1283 = vmatpush.msra.mxu1 %v1245_v41 }
 0xa58   :  { %1284 = vmatpush.msra.mxu1 %v1244_v46  ;;  %v1162_v46 = vld [vmem:[#allocation3 + $0x280] sm:$0xff] }
 0xa5a   :  { %1285 = vmatpush.msra.mxu1 %v1243_v47  ;;  %v1311_v47 = vld [vmem:[#allocation3 + $0x458] sm:$0xff] }
 0xa67   :  { %v826_v44 = vpop.permute.xlu2 %825 }
 0xa71   :  { %v1625_v57 = vpop.permute.xlu2 %1624 }
 0xa72   :  { %v1627_v59 = vunpack.i.h.bf16 %v1625_v57  ;;  %v1626_v58 = vunpack.i.l.bf16 %v1625_v57  ;;  %v1310_v57 = vld [vmem:[#allocation3 + $0x450] sm:$0xff] }
 0xa81   :  { %v858_v49 = vpop.permute.xlu0 %857  ;;  %v1640_v34 = vpop.permute.xlu2 %1639 }
 0xa82   :  { %v1641_v41 = vunpack.i.l.bf16 %v1640_v34 }
 0xa83   :  { %v794_v42 = vpop.permute.xlu1 %793 }
 0xa84   :  { %v880_v45 = vsel %vm88_vm0, %v2055_v12, %v794_v42  ;;  %v1163_v42 = vld [vmem:[#allocation3 + $0x288] sm:$0xff] }
 0xa85   :  { %v888_v50 = vsel %vm629_vm3, %v880_v45, %v826_v44  ;;  %v1238_v44 = vld [vmem:[#allocation3 + $0x378] sm:$0xff]  ;;  %v1642_v45 = vunpack.i.h.bf16 %v1640_v34  ;;  %v1367_v34 = vld [vmem:[#allocation3 + $0x4b0] sm:$0xff] }
 0xa86   :  { %v897_v51 = vsel %vm895_vm4, %v888_v50, %v858_v49  ;;  %v1237_v49 = vld [vmem:[#allocation3 + $0x370] sm:$0xff] }
 0xa87   :  { %964 = vmatmul.f32.vlgmr.msrb.gmra.mxu3 %v897_v51 }
 0xa88   :  { %1185 = vmatpush.msrb.mxu3 %v1177_v48 }
 0xa8a   :  { %1186 = vmatpush.msrb.mxu3 %v1176_v52  ;;  %v1236_v52 = vld [vmem:[#allocation3 + $0x368] sm:$0xff] }
 0xa8b   :  { %v1630_v55 = vpop.permute.xlu0 %1629 }
 0xa8c   :  { %1187 = vmatpush.msrb.mxu3 %v1175_v53  ;;  %v1632_v62 = vunpack.i.h.bf16 %v1630_v55  ;;  %v1631_v63 = vunpack.i.l.bf16 %v1630_v55  ;;  %v1235_v55 = vld [vmem:[#allocation3 + $0x360] sm:$0xff] }
 0xa8d   :  { %v1635_v12 = vpop.permute.xlu1 %1634 }
 0xa8e   :  { %1188 = vmatpush.msrb.mxu3 %v1174_v54  ;;  %v1637_v4 = vunpack.i.h.bf16 %v1635_v12  ;;  %v1636_v3 = vunpack.i.l.bf16 %v1635_v12  ;;  %v1307_v54 = vld [vmem:[#allocation3 + $0x438] sm:$0xff]  ;;  %v1306_v12 = vld [vmem:[#allocation3 + $0x430] sm:$0xff] }
 0xa90   :  { %v881_v0 = vsel %vm88_vm0, %v2057_v15, %v1637_v4  ;;  %1189 = vmatpush.msrb.mxu3 %v1173_v56  ;;  %v879_v2 = vsel %vm88_vm0, %v2053_v14, %v1636_v3  ;;  %v770_v14 = vadd.f32 %v2086_v43, %v2059_v16  ;;  %v1169_v15 = vld [vmem:[#allocation3 + $0x2b8] sm:$0xff]  ;;  %v771_v43 = vadd.f32 %v2091_v61, %v2061_v17  ;;  %v1309_v56 = vld [vmem:[#allocation3 + $0x448] sm:$0xff] }
 0xa91   :  { %v887_v5 = vsel %vm629_vm3, %v879_v2, %v1626_v58  ;;  %v889_v6 = vsel %vm629_vm3, %v881_v0, %v1627_v59  ;;  %v1234_v4 = vld [vmem:[#allocation3 + $0x358] sm:$0xff]  ;;  %v773_v3 = vadd.f32 %v2107_v11, %v2065_v25  ;;  %v1305_v59 = vld [vmem:[#allocation3 + $0x428] sm:$0xff]  ;;  %v772_v58 = vadd.f32 %v2102_v1, %v2063_v20  ;;  %v1231_v1 = vld [vmem:[#allocation3 + $0x340] sm:$0xff] }
 0xa92   :  { %1190 = vmatpush.msrb.mxu3 %v1172_v60  ;;  %v896_v9 = vsel %vm895_vm4, %v887_v5, %v1631_v63  ;;  %v898_v10 = vsel %vm895_vm4, %v889_v6, %v1632_v62  ;;  %v778_v24 = vmul.f32 0.5, %v770_v14  ;;  %v779_v40 = vmul.f32 0.5, %v771_v43  ;;  %v1308_v60 = vld [vmem:[#allocation3 + $0x440] sm:$0xff]  ;;  %v1233_v62 = vld [vmem:[#allocation3 + $0x350] sm:$0xff]  ;;  %v1372_v0 = vld [vmem:[#allocation3 + $0x4d8] sm:$0xff] }
 0xa93   :  { %1007 = vmatmul.f32.vlgmr.msrb.gmra.mxu0 %v896_v9  ;;  %1071 = vmatmul.f32.vlgmr.msra.gmra.mxu3 %v898_v10  ;;  %v1304_v63 = vld [vmem:[#allocation3 + $0x420] sm:$0xff]  ;;  %v1232_v2 = vld [vmem:[#allocation3 + $0x348] sm:$0xff]  ;;  %v781_v5 = vmul.f32 0.5, %v773_v3  ;;  %v1371_v6 = vld [vmem:[#allocation3 + $0x4d0] sm:$0xff]  ;;  %v780_v11 = vmul.f32 0.5, %v772_v58 }
 0xa94   :  { %1191 = vmatpush.msrb.mxu3 %v1171_v7  ;;  %1217 = vmatpush.msrb.mxu0 %v1181_v8  ;;  %v1303_v8 = vld [vmem:[#allocation3 + $0x418] sm:$0xff]  ;;  %v1370_v9 = vld [vmem:[#allocation3 + $0x4c8] sm:$0xff]  ;;  %v1300_v43 = vld [vmem:[#allocation3 + $0x400] sm:$0xff] }
 0xa95   :  { %v1451_v10 = vld [vmem:[%s2273_s9 + $0x78] sm:$0xff] }
 0xa96   :  { %1192 = vmatpush.msrb.mxu3 %v1170_v13  ;;  %1218 = vmatpush.msrb.mxu0 %v1180_v18  ;;  %v1302_v13 = vld [vmem:[#allocation3 + $0x410] sm:$0xff]  ;;  %v1230_v14 = vld [vmem:[#allocation3 + $0x338] sm:$0xff] }
 0xa97   :  { %1456 = vmatpush.msra.mxu2 %v1451_v10  ;;  %v1441_v10 = vld [vmem:[%s2273_s9 + $0x28] sm:$0xff] }
 0xa98   :  { %1193 = vmatpush.msrb.mxu3 %v1169_v15  ;;  %1219 = vmatpush.msrb.mxu0 %v1179_v19  ;;  %v1369_v19 = vld [vmem:[#allocation3 + $0x4c0] sm:$0xff] }
 0xa9a   :  { %1194 = vmatpush.msrb.mxu3 %v1168_v21  ;;  %1220 = vmatpush.msrb.mxu0 %v1178_v22  ;;  %v1450_v21 = vld [vmem:[%s2273_s9 + $0x70] sm:$0xff] }
 0xa9b   :  { %1566 = vmatmul.msk.f32.vlgmr.msra.gmra.mxu0 %vm88_vm0, %v778_v24  ;;  %v1301_v24 = vld [vmem:[#allocation3 + $0x408] sm:$0xff]  ;;  %1457 = vmatpush.msra.mxu2 %v1450_v21 }
 0xa9c   :  { %1195 = vmatpush.msrb.mxu3 %v1167_v26  ;;  %1250 = vmatpush.msra.mxu0 %v1242_v27  ;;  %v1229_v27 = vld [vmem:[#allocation3 + $0x330] sm:$0xff]  ;;  %v1437_v21 = vld [vmem:[%s2273_s9 + $0x8] sm:$0xff] }
 0xa9d   :  { %v1645_v31 = vpop.permute.xlu1 %1644  ;;  %v2162_v7 = vpop.permute.xlu2 %1659 }
 0xa9e   :  { %1196 = vmatpush.msrb.mxu3 %v1166_v29  ;;  %1251 = vmatpush.msra.mxu0 %v1241_v30  ;;  %v1647_v35 = vunpack.i.h.bf16 %v1645_v31  ;;  %v1646_v36 = vunpack.i.l.bf16 %v1645_v31  ;;  %v1661_v15 = vunpack.i.l.bf16 %v2162_v7  ;;  %v1368_v29 = vld [vmem:[#allocation3 + $0x4b8] sm:$0xff]  ;;  %v1449_v30 = vld [vmem:[%s2273_s9 + $0x68] sm:$0xff]  ;;  %v1662_v3 = vunpack.i.h.bf16 %v2162_v7 }
 0xa9f   :  { %v1228_v31 = vld [vmem:[#allocation3 + $0x328] sm:$0xff]  ;;  %1458 = vmatpush.msra.mxu2 %v1449_v30  ;;  %v1436_v30 = vld [vmem:[%s2273_s9] sm:$0xff] }
 0xaa0   :  { %v883_v39 = vsel %vm88_vm0, %v2061_v17, %v1646_v36  ;;  %1197 = vmatpush.msrb.mxu3 %v1165_v32  ;;  %1252 = vmatpush.msra.mxu0 %v1240_v33  ;;  %v882_v61 = vsel %vm88_vm0, %v2059_v16, %v1647_v35  ;;  %v864_v17 = vpop.permute.xlu0 %863  ;;  %v884_v32 = vsel %vm88_vm0, %v2063_v20, %v1661_v15  ;;  %v1448_v35 = vld [vmem:[%s2273_s9 + $0x60] sm:$0xff]  ;;  %v1298_v20 = vld [vmem:[#allocation3 + $0x3f0] sm:$0xff] }
 0xaa1   :  { %v891_v50 = vsel %vm629_vm3, %v883_v39, %v1641_v41  ;;  %v890_v51 = vsel %vm629_vm3, %v882_v61, %v1642_v45  ;;  %v1299_v36 = vld [vmem:[#allocation3 + $0x3f8] sm:$0xff]  ;;  %v1366_v39 = vld [vmem:[#allocation3 + $0x4a8] sm:$0xff]  ;;  %1459 = vmatpush.msra.mxu2 %v1448_v35  ;;  %v1375_v45 = vld [vmem:[#allocation3 + $0x4f0] sm:$0xff] }
 0xaa2   :  { %1198 = vmatpush.msrb.mxu3 %v1164_v37  ;;  %1253 = vmatpush.msra.mxu0 %v1239_v38  ;;  %v900_v16 = vsel %vm895_vm4, %v891_v50, %v864_v17  ;;  %v1227_v37 = vld [vmem:[#allocation3 + $0x320] sm:$0xff]  ;;  %v1297_v61 = vld [vmem:[#allocation3 + $0x3e8] sm:$0xff]  ;;  %v774_v50 = vadd.f32 %v2111_v23, %v2067_v28 }
 0xaa3   :  { %1567 = vmatmul.msk.f32.vlgmr.msrb.gmra.mxu0 %vm88_vm0, %v779_v40  ;;  %v1376_v40 = vld [vmem:[#allocation3 + $0x4f8] sm:$0xff]  ;;  %v1296_v17 = vld [vmem:[#allocation3 + $0x3e0] sm:$0xff]  ;;  %v1438_v15 = vld [vmem:[%s2273_s9 + $0x10] sm:$0xff] }
 0xaa4   :  { %1199 = vmatpush.msrb.mxu3 %v1163_v42  ;;  %1254 = vmatpush.msra.mxu0 %v1238_v44  ;;  %v1365_v42 = vld [vmem:[#allocation3 + $0x4a0] sm:$0xff]  ;;  %v1447_v44 = vld [vmem:[%s2273_s9 + $0x58] sm:$0xff] }
 0xaa5   :  { %v862_v48 = vpop.permute.xlu1 %861  ;;  %1460 = vmatpush.msra.mxu2 %v1447_v44  ;;  %v1361_v23 = vld [vmem:[#allocation3 + $0x480] sm:$0xff] }
 0xaa6   :  { %1200 = vmatpush.msrb.mxu3 %v1162_v46  ;;  %1255 = vmatpush.msra.mxu0 %v1237_v49  ;;  %v899_v53 = vsel %vm895_vm4, %v890_v51, %v862_v48  ;;  %v1364_v46 = vld [vmem:[#allocation3 + $0x498] sm:$0xff]  ;;  %v1446_v49 = vld [vmem:[%s2273_s9 + $0x50] sm:$0xff] }
 0xaa7   :  { %1201 = vmatmul.f32.vlgmr.msrb.gmra.mxu3 %v900_v16  ;;  %1136 = vmatmul.f32.vlgmr.msrb.gmra.mxu1 %v899_v53  ;;  %v1374_v48 = vld [vmem:[#allocation3 + $0x4e8] sm:$0xff]  ;;  %v1363_v51 = vld [vmem:[#allocation3 + $0x490] sm:$0xff]  ;;  %v782_v16 = vmul.f32 0.5, %v774_v50 }
 0xaa8   :  { %1347 = vmatpush.msra.mxu3 %v1311_v47  ;;  %1256 = vmatpush.msra.mxu0 %v1236_v52  ;;  %v1295_v47 = vld [vmem:[#allocation3 + $0x3d8] sm:$0xff]  ;;  %v1373_v52 = vld [vmem:[#allocation3 + $0x4e0] sm:$0xff]  ;;  %v1362_v53 = vld [vmem:[#allocation3 + $0x488] sm:$0xff] }
 0xaa9   :  { %1315 = vmatpush.msrb.mxu1 %v1307_v54  ;;  %1461 = vmatpush.msra.mxu2 %v1446_v49  ;;  %v804_v54 = vpop.permute.xlu2 %803 }
 0xaaa   :  { %1348 = vmatpush.msra.mxu3 %v1310_v57  ;;  %1257 = vmatpush.msra.mxu0 %v1235_v55  ;;  %v1294_v57 = vld [vmem:[#allocation3 + $0x3d0] sm:$0xff] }
 0xaab   :  { %1316 = vmatpush.msrb.mxu1 %v1306_v12  ;;  %v1293_v12 = vld [vmem:[#allocation3 + $0x3c8] sm:$0xff] }
 0xaac   :  { %1349 = vmatpush.msra.mxu3 %v1309_v56  ;;  %1258 = vmatpush.msra.mxu0 %v1234_v4  ;;  %v885_v56 = vsel %vm88_vm0, %v2065_v25, %v804_v54  ;;  %v1360_v4 = vld [vmem:[#allocation3 + $0x478] sm:$0xff]  ;;  %v886_v25 = vsel %vm88_vm0, %v2067_v28, %v1662_v3 }
 0xaad   :  { %1317 = vmatpush.msrb.mxu1 %v1305_v59  ;;  %v1444_v28 = vld [vmem:[%s2273_s9 + $0x40] sm:$0xff] }
 0xaae   :  { %1350 = vmatpush.msra.mxu3 %v1308_v60  ;;  %1259 = vmatpush.msra.mxu0 %v1233_v62  ;;  %v1292_v60 = vld [vmem:[#allocation3 + $0x3c0] sm:$0xff]  ;;  %v1666_v54 = vld [vmem:[%s2272_s8] ss:$0 sm:$0xff] }
 0xaaf   :  { %1318 = vmatpush.msrb.mxu1 %v1304_v63  ;;  %1569 = vmatmul.msk.f32.vlgmr.msra.gmra.mxu3 %vm88_vm0, %v781_v5  ;;  %v1359_v63 = vld [vmem:[#allocation3 + $0x470] sm:$0xff]  ;;  %v1669_v3 = vld [vmem:[%s2276_s12] ss:$0 sm:$0xff] }
 0xab0   :  { %1380 = vmatpush.msrb.mxu3 %v1372_v0  ;;  %1260 = vmatpush.msra.mxu0 %v1232_v2  ;;  %v1358_v2 = vld [vmem:[#allocation3 + $0x468] sm:$0xff] }
 0xab1   :  { %1568 = vmatmul.msk.f32.vlgmr.msra.gmra.mxu1 %vm88_vm0, %v780_v11  ;;  %v2169_v18 = vpop.permute.xlu0 %1649 }
 0xab2   :  { %1381 = vmatpush.msrb.mxu3 %v1371_v6  ;;  %1319 = vmatpush.msrb.mxu1 %v1303_v8  ;;  %v1651_v22 = vunpack.i.l.bf16 %v2169_v18  ;;  %v1652_v62 = vunpack.i.h.bf16 %v2169_v18  ;;  %v1357_v6 = vld [vmem:[#allocation3 + $0x460] sm:$0xff]  ;;  %v1439_v18 = vld [vmem:[%s2273_s9 + $0x18] sm:$0xff] }
 0xab3   :  { %1261 = vmatpush.msra.mxu0 %v1231_v1  ;;  %v2176_v26 = vpop.permute.xlu1 %1654  ;;  %v1445_v8 = vld [vmem:[%s2273_s9 + $0x48] sm:$0xff]  ;;  %v1443_v1 = vld [vmem:[%s2273_s9 + $0x38] sm:$0xff] }
 0xab4   :  { %1382 = vmatpush.msrb.mxu3 %v1370_v9  ;;  %1320 = vmatpush.msrb.mxu1 %v1302_v13  ;;  %v1656_v33 = vunpack.i.l.bf16 %v2176_v26  ;;  %v892_v38 = vsel %vm629_vm3, %v884_v32, %v1651_v22  ;;  %v1657_v5 = vunpack.i.h.bf16 %v2176_v26  ;;  %v894_v11 = vsel %vm629_vm3, %v886_v25, %v1652_v62  ;;  %v1442_v9 = vld [vmem:[%s2273_s9 + $0x30] sm:$0xff]  ;;  %v1440_v13 = vld [vmem:[%s2273_s9 + $0x20] sm:$0xff] }
 0xab5   :  { %1262 = vmatpush.msra.mxu0 %v1230_v14  ;;  %1462 = vmatpush.msra.mxu2 %v1445_v8  ;;  %v985_v14 = vpop.f32.mrf.mxu1 }
 0xab6   :  { %1383 = vmatpush.msrb.mxu3 %v1369_v19  ;;  %1321 = vmatpush.msrb.mxu1 %v1301_v24  ;;  %v901_v41 = vsel %vm895_vm4, %v892_v38, %v1656_v33  ;;  %v903_v7 = vsel %vm895_vm4, %v894_v11, %v1657_v5 }
 0xab7   :  { %1263 = vmatpush.msra.mxu0 %v1229_v27  ;;  %1463 = vmatpush.msra.mxu2 %v1444_v28 }
 0xab8   :  { %1384 = vmatpush.msrb.mxu3 %v1368_v29  ;;  %1322 = vmatpush.msrb.mxu1 %v1300_v43 }
 0xab9   :  { %1264 = vmatpush.msra.mxu0 %v1228_v31  ;;  %v836_v55 = vpop.permute.xlu0 %835  ;;  %1464 = vmatpush.msra.mxu2 %v1443_v1 }
 0xaba   :  { %1385 = vmatpush.msrb.mxu3 %v1367_v34  ;;  %1323 = vmatpush.msrb.mxu1 %v1299_v36  ;;  %v893_v59 = vsel %vm629_vm3, %v885_v56, %v836_v55 }
 0xabb   :  { %1265 = vmatpush.msra.mxu0 %v1227_v37  ;;  %v868_v58 = vpop.permute.xlu1 %867  ;;  %1465 = vmatpush.msra.mxu2 %v1442_v9 }
 0xabc   :  { %1386 = vmatpush.msrb.mxu3 %v1366_v39  ;;  %1266 = vmatmul.f32.vlgmr.msra.gmra.mxu0 %v901_v41  ;;  %v902_v0 = vsel %vm895_vm4, %v893_v59, %v868_v58  ;;  %v1670_v58 = vld [vmem:[%s2277_s13] ss:$0 sm:$0xff] }
 0xabd   :  { %1324 = vmatpush.msrb.mxu1 %v1298_v20  ;;  %1412 = vmatpush.msrb.mxu0 %v1376_v40  ;;  %v1028_v19 = vpop.f32.mrf.mxu1 }
 0xabe   :  { %1387 = vmatpush.msrb.mxu3 %v1365_v42  ;;  %1466 = vmatpush.msra.mxu2 %v1441_v10 }
 0xabf   :  { %1325 = vmatpush.msrb.mxu1 %v1297_v61  ;;  %1413 = vmatpush.msrb.mxu0 %v1375_v45 }
 0xac0   :  { %1388 = vmatpush.msrb.mxu3 %v1364_v46  ;;  %1467 = vmatpush.msra.mxu2 %v1440_v13 }
 0xac1   :  { %1326 = vmatpush.msrb.mxu1 %v1296_v17  ;;  %1414 = vmatpush.msrb.mxu0 %v1374_v48 }
 0xac2   :  { %1389 = vmatpush.msrb.mxu3 %v1363_v51  ;;  %1468 = vmatpush.msra.mxu2 %v1439_v18 }
 0xac3   :  { %1327 = vmatpush.msrb.mxu1 %v1295_v47  ;;  %1415 = vmatpush.msrb.mxu0 %v1373_v52  ;;  %v1664_v47 = vld [vmem:[%s2270_s6] ss:$0 sm:$0xff] }
 0xac4   :  { %1390 = vmatpush.msrb.mxu3 %v1362_v53  ;;  %1570 = vmatmul.msk.f32.vlgmr.msrb.gmra.mxu0 %vm88_vm0, %v782_v16  ;;  %v1665_v53 = vld [vmem:[%s2271_s7] ss:$0 sm:$0xff] }
 0xac5   :  { %1328 = vmatpush.msrb.mxu1 %v1294_v57  ;;  %1469 = vmatpush.msra.mxu2 %v1438_v15  ;;  %v1092_v26 = vpop.f32.mrf.mxu1 }
 0xac6   :  { %1391 = vmatpush.msrb.mxu3 %v1361_v23  ;;  %v1667_v23 = vld [vmem:[%s2274_s10] ss:$0 sm:$0xff] }
 0xac7   :  { %1329 = vmatpush.msrb.mxu1 %v1293_v12  ;;  %1470 = vmatpush.msra.mxu2 %v1437_v21  ;;  %v1668_v12 = vld [vmem:[%s2275_s11] ss:$0 sm:$0xff] }
 0xac8   :  { %1392 = vmatpush.msrb.mxu3 %v1360_v4 }
 0xac9   :  { %1330 = vmatpush.msrb.mxu1 %v1292_v60  ;;  %1471 = vmatpush.msra.mxu2 %v1436_v30 }
 0xaca   :  { %1331 = vmatmul.f32.vlgmr.msrb.gmra.mxu1 %v902_v0  ;;  %1393 = vmatpush.msrb.mxu3 %v1359_v63  ;;  %v1671_v0 = vld [vmem:[#allocation2] ss:$0 sm:$0xff] }
 0xacc   :  { %1394 = vmatpush.msrb.mxu3 %v1358_v2 }
 0xace   :  { %1395 = vmatpush.msrb.mxu3 %v1357_v6 }
 0xacf   :  { %1396 = vmatmul.f32.vlgmr.msrb.gmra.mxu3 %v903_v7 }
 0xb0a   :  { %v965_v24 = vpop.f32.mrf.mxu3 }
 0xb0b   :  { %v986_v33 = vadd.f32 %v985_v14, %v965_v24 }
 0xb10   :  { %v1008_v22 = vpop.f32.mrf.mxu0 }
 0xb11   :  { %v1009_v35 = vadd.f32 %v1008_v22, %v986_v33 }
 0xb13   :  { %v1029_v38 = vadd.f32 %v1028_v19, %v1009_v35 }
 0xb16   :  { %v1072_v29 = vpop.f32.mrf.mxu3 }
 0xb17   :  { %v1093_v36 = vadd.f32 %v1092_v26, %v1072_v29 }
 0xb18   :  { %v1157_v27 = vpop.f32.mrf.mxu0 }
 0xb19   :  { %v1095_v40 = vadd.f32 %v1093_v36, %v1029_v38 }
 0xb20   :  { %v1222_v31 = vpop.f32.mrf.mxu0 }
 0xb24   :  { %v1137_v43 = vpop.f32.mrf.mxu1 }
 0xb25   :  { %v1158_v39 = vadd.f32 %v1157_v27, %v1137_v43 }
 0xb27   :  { %v1160_v44 = vadd.f32 %v1158_v39, %v1095_v40 }
 0xb2a   :  { %v1202_v32 = vpop.f32.mrf.mxu3 }
 0xb2b   :  { %v1223_v41 = vadd.f32 %v1222_v31, %v1202_v32 }
 0xb2d   :  { %v1225_v45 = vadd.f32 %v1223_v41, %v1160_v44 }
 0xb2e   :  { %v1287_v34 = vpop.f32.mrf.mxu1 }
 0xb32   :  { %v1352_v20 = vpop.f32.mrf.mxu3 }
 0xb39   :  { %v1267_v37 = vpop.f32.mrf.mxu0 }
 0xb3a   :  { %v1288_v61 = vadd.f32 %v1287_v34, %v1267_v37 }
 0xb3c   :  { %v1290_v49 = vadd.f32 %v1288_v61, %v1225_v45 }
 0xb41   :  { %v1417_v50 = vpop.f32.mrf.mxu0 }
 0xb47   :  { %v1332_v42 = vpop.f32.mrf.mxu1 }
 0xb48   :  { %v1353_v46 = vadd.f32 %v1352_v20, %v1332_v42 }
 0xb4a   :  { %v1355_v48 = vadd.f32 %v1353_v46, %v1290_v49 }
 0xb52   :  { %v1397_v17 = vpop.f32.mrf.mxu3 }
 0xb53   :  { %v1418_v51 = vadd.f32 %v1417_v50, %v1397_v17 }
 0xb55   :  { %v1420_v52 = vadd.f32 %v1418_v51, %v1355_v48 }
 0xb57   :  { %v1425_v16 = vadd.f32 %v1664_v47, %v1420_v52 }
 0xb59   :  { %v1430_v57 = vmul.f32 %v1665_v53, %v1425_v16 }
 0xb5b   :  { %v1435_v55 = vadd.f32 %v1666_v54, %v1430_v57 }
 0xb5d   :  { %1472 = vmatmul.f32.vlgmr.msra.gmra.mxu2 %v1435_v55 }
 0xbe0   :  { %v1473_v56 = vpop.f32.mrf.mxu2 }
 0xbe1   :  { %v1474_v4 = vadd.f32 %v1667_v23, %v1473_v56 }
 0xbe3   :  { %v1480_v59 = vmul.f32 %v1668_v12, %v1474_v4 }
 0xbe5   :  { %v1485_v60 = vadd.f32 %v1669_v3, %v1480_v59 }
 0xbe7   :  { %v1490_v62 = vmul.f32 %v1670_v58, %v1485_v60 }
 0xbe9   :  { %v1491_v63 = vsel %vm88_vm0, %v1490_v62, 0.0 }
 0xbea   :  { %1492 = vadd.xlane.f32.xlu2 %v1491_v63 }
 0xc5d   :  { %v1493_v2 = vpop.xlane.xlu2 %1492 }
 0xc5e   :  { %v1498_v25 = vadd.f32 %v1671_v0, %v1493_v2 }
 0xc60   :  { %v1571_v5 = vmul.f32 -1.442695, %v1498_v25 }
 0xc62   :  { %1736 = vpow2.f32 %v1571_v5 }
 0xc68   :  { %v1737_v6 = vpop.eup %1736 }
 0xc69   :  { %v1502_v11 = vadd.f32 1.0, %v1737_v6 }
 0xc6b   :  { %1738 = vrcp.f32 %v1502_v11  ;;  %v1514_v1 = vand.u32 2147483648, %v1502_v11  ;;  %v1512_v10 = vand.u32 2147483647, %v1502_v11  ;;  %vm1508_vm6 = vweird.f32 %v1502_v11 }
 0xc6d   :  { %v1515_v18 = vor.u32 1.1754944e-38, %v1514_v1  ;;  %vm1513_vm8 = vcmp.eq.f32.partialorder %v1512_v10, 8.507059e+37 }
 0xc71   :  { %v1739_v7 = vpop.eup %1738 }
 0xc72   :  { %v1504_v8 = vmul.f32 %v1739_v7, %v1502_v11  ;;  %vm1509_vm5 = vweird.f32 %v1739_v7 }
 0xc73   :  { %vm1510_vm0 = vmor %vm1508_vm6, %vm1509_vm5 }
 0xc74   :  { %v1505_v28 = vsub.f32 1.0, %v1504_v8 }
 0xc76   :  { %v1506_v9 = vmul.f32 %v1739_v7, %v1505_v28 }
 0xc78   :  { %v1507_v13 = vadd.f32 %v1739_v7, %v1506_v9 }
 0xc7a   :  { %v1511_v14 = vsel %vm1510_vm0, %v1739_v7, %v1507_v13 }
 0xc7b   :  { %v1516_v15 = vsel %vm1513_vm8, %v1515_v18, %v1511_v14 }
 0xc7c   :  { %1519 = vst.msk [vmem:[%s2279_s15] sm:$0xf] %vm1518_vm7, %v1516_v15 }
 0xc7d   :  { %1524 = vsyncpa [#allocation4], 1 }

</bundles_post_ra>
